<compile_context>
chip_gen: v6e
topology: v6e:2x2x1
jax: 0.10.0
libtpu: 0.0.40
codegen_flags: <defaults>
</compile_context>

<pallas_src>
import jax
import jax.numpy as jnp
from jax import lax
from jax.experimental import pallas as pl
from jax.experimental.pallas import tpu as pltpu

HIDDEN = 64          # model hidden size
GW = 128             # per-gate lane tile width (128-lane aligned gate slices)
HP = 128             # padded hidden/state width carried in h/c (== GW)
BATCH_BLOCK = 256    # batch rows per grid step when the batch is large


def lstm_kernel(x_ref, w_hh_ref, w_ih_row_ref, b_ref, w_out_row_ref, b_out_ref,
                o_ref, xproj_ref):
    T, Bb = x_ref.shape
    gw4 = w_hh_ref.shape[1]
    gw = gw4 // 4                                  # == GW == 128

    # ---- hoisted, vectorized input projection (input_size == 1) -------------
    # One broadcast of W_ih / bias for all T steps, written once to a VMEM
    # scratch; per-step reads are cheap leading-dim loads off the serial
    # h/c critical path.
    xproj_ref[...] = (x_ref[...][:, :, None] * w_ih_row_ref[...][None, :, :]
                      + b_ref[...][None, :, :])    # (T, Bb, 4*GW) f32

    w_hh = w_hh_ref[...]                           # (HP, 4*GW) f32

    h0 = jnp.zeros((Bb, HP), jnp.float32)
    c0 = jnp.zeros((Bb, GW), jnp.float32)

    def step(t, carry):
        h, c = carry
        # recurrent matmul: f32 operands (no bf16 feedback rounding), f32 acc
        gates = xproj_ref[t] + jnp.dot(h, w_hh,
                                       preferred_element_type=jnp.float32)
        # Single EUP call for all four gates: i/f/o columns were pre-scaled by
        # 0.5 at pack time, so sigmoid(x) = 0.5 * tanh(x/2) + 0.5.
        ta = jnp.tanh(gates)                       # (Bb, 4*GW)
        sio = 0.5 * ta[:, :3 * gw] + 0.5           # lane-aligned whole-tile slice
        g = ta[:, 3 * gw:]                         # tanh gate, lane-aligned
        i = sio[:, 0:gw]
        f = sio[:, gw:2 * gw]
        o = sio[:, 2 * gw:3 * gw]
        c = f * c + i * g                          # pure VPU, no rotates
        h = o * jnp.tanh(c)                        # pad lanes stay exactly 0
        return (h, c)

    # Short static trip count -> fully unrolled, but live ranges stay bounded.
    # For long sequences drop to unroll=4..8.
    h, _ = lax.fori_loop(0, T, step, (h0, c0), unroll=True)

    # Linear(64 -> 1) on the last hidden state: VPU multiply + lane reduction
    # (zero-padded lanes contribute nothing).
    o_ref[...] = (jnp.sum(h * w_out_row_ref[...], axis=-1, keepdims=True)
                  + b_out_ref[...])


def prepare_params(params):
    """One-time packing: PyTorch gate order [i,f,g,o] -> slot order [i,f,o,g],
    each gate padded to its own 128-lane tile, 0.5 pre-scale folded into the
    i/f/o columns (tanh-based sigmoid), weight transposes, bias folding."""
    H = HIDDEN
    b_sum = params["b_ih"] + params["b_hh"]
    w_hh_p = jnp.zeros((HP, 4 * GW), jnp.float32)
    w_row_p = jnp.zeros((1, 4 * GW), jnp.float32)
    b_p = jnp.zeros((1, 4 * GW), jnp.float32)
    for slot, (src, scale) in enumerate(zip((0, 1, 3, 2), (0.5, 0.5, 0.5, 1.0))):
        cols = slice(slot * GW, slot * GW + H)
        rows = slice(src * H, (src + 1) * H)
        w_hh_p = w_hh_p.at[:H, cols].set(scale * params["w_hh"][rows, :].T)
        w_row_p = w_row_p.at[0, cols].set(scale * params["w_ih"][rows, 0])
        b_p = b_p.at[0, cols].set(scale * b_sum[rows])
    w_out_p = jnp.zeros((1, HP), jnp.float32).at[0, :H].set(
        params["w_out"][0].astype(jnp.float32))
    return {
        "w_hh": w_hh_p,                                        # (128, 512) f32
        "w_ih_row": w_row_p,                                   # (1, 512)   f32
        "b": b_p,                                              # (1, 512)   f32
        "w_out_row": w_out_p,                                  # (1, 128)   f32
        "b_out": params["b_out"].reshape(1, 1).astype(jnp.float32),
    }


@jax.jit
def lstm_forward(x, packed):
    B, T, _ = x.shape
    # Pad batch to a sublane multiple; block it over a grid if large.
    Bp = -(-B // 8) * 8
    if Bp > BATCH_BLOCK:
        Bp = -(-Bp // BATCH_BLOCK) * BATCH_BLOCK
        bb = BATCH_BLOCK
    else:
        bb = Bp
    x_tb = x.reshape(B, T).T                   # (T, B): layout plumbing only
    if Bp != B:
        x_tb = jnp.pad(x_tb, ((0, 0), (0, Bp - B)))
    grid = (Bp // bb,)

    out = pl.pallas_call(
        lstm_kernel,
        out_shape=jax.ShapeDtypeStruct((Bp, 1), jnp.float32),
        grid_spec=pltpu.PrefetchScalarGridSpec(
            num_scalar_prefetch=0,
            grid=grid,
            in_specs=[
                pl.BlockSpec((T, bb), lambda i: (0, i)),        # x (time-major)
                pl.BlockSpec((HP, 4 * GW), lambda i: (0, 0)),   # W_hh
                pl.BlockSpec((1, 4 * GW), lambda i: (0, 0)),    # W_ih row
                pl.BlockSpec((1, 4 * GW), lambda i: (0, 0)),    # bias
                pl.BlockSpec((1, HP), lambda i: (0, 0)),        # W_out row
                pl.BlockSpec((1, 1), lambda i: (0, 0)),         # b_out
            ],
            out_specs=pl.BlockSpec((bb, 1), lambda i: (i, 0)),
            scratch_shapes=[pltpu.VMEM((T, bb, 4 * GW), jnp.float32)],
        ),
        # Batch blocks are independent -> shards across v7x's 2 TensorCores;
        # no effect on single-TC v5e/v6e.
        compiler_params=pltpu.CompilerParams(
            dimension_semantics=("parallel",)),
    )(x_tb, packed["w_hh"], packed["w_ih_row"], packed["b"],
      packed["w_out_row"], packed["b_out"])
    return out[:B]


def lstm_ref(x, params):
    """Pure-JAX f32 reference of the PyTorch forward, for validation."""
    B, T, _ = x.shape
    w_ih, w_hh = params["w_ih"], params["w_hh"]
    b_ih, b_hh = params["b_ih"], params["b_hh"]
    H = HIDDEN

    def step(carry, xt):
        h, c = carry
        gates = xt @ w_ih.T + b_ih + h @ w_hh.T + b_hh
        i = jax.nn.sigmoid(gates[:, 0 * H:1 * H])
        f = jax.nn.sigmoid(gates[:, 1 * H:2 * H])
        g = jnp.tanh(gates[:, 2 * H:3 * H])
        o = jax.nn.sigmoid(gates[:, 3 * H:4 * H])
        c = f * c + i * g
        h = o * jnp.tanh(c)
        return (h, c), None

    h0 = jnp.zeros((B, H), jnp.float32)
    c0 = jnp.zeros((B, H), jnp.float32)
    (h_T, _), _ = lax.scan(step, (h0, c0), jnp.transpose(x, (1, 0, 2)))
    return h_T @ params["w_out"].T + params["b_out"]


def init_params(key):
    # PyTorch default init: U(-1/sqrt(H), 1/sqrt(H))
    k_lstm = 1.0 / jnp.sqrt(jnp.float32(HIDDEN))
    k_lin = 1.0 / jnp.sqrt(jnp.float32(HIDDEN))
    ks = jax.random.split(key, 6)
    u = lambda k, shape, scale: jax.random.uniform(
        k, shape, jnp.float32, minval=-scale, maxval=scale)
    return {
        "w_ih": u(ks[0], (4 * HIDDEN, 1), k_lstm),
        "w_hh": u(ks[1], (4 * HIDDEN, HIDDEN), k_lstm),
        "b_ih": u(ks[2], (4 * HIDDEN,), k_lstm),
        "b_hh": u(ks[3], (4 * HIDDEN,), k_lstm),
        "w_out": u(ks[4], (1, HIDDEN), k_lin),
        "b_out": u(ks[5], (1,), k_lin),
    }


if __name__ == "__main__":
    key = jax.random.PRNGKey(0)
    pkey, xkey = jax.random.split(key)
    params = init_params(pkey)
    packed = prepare_params(params)     # one-time weight packing (not per call)

    B, T = 8, 8                         # batch fills the 8 sublanes of a vreg
    x = jax.random.normal(xkey, (B, T, 1), jnp.float32)   # batch_first (B, T, 1)

    out = jax.block_until_ready(lstm_forward(x, packed))
    ref = lstm_ref(x, params)
    assert out.shape == (B, 1)
    assert jnp.allclose(out, ref, atol=1e-2, rtol=1e-2), (out, ref)
    print("KERNEL_OK")
</pallas_src>

<mosaic_0001>
module attributes {stable_mosaic.version = 11 : i64} {
  func.func @lstm_kernel(%arg0: i32, %arg1: memref<8x8xf32, #tpu.memory_space<vmem>>, %arg2: memref<128x512xf32, #tpu.memory_space<vmem>>, %arg3: memref<1x512xf32, #tpu.memory_space<vmem>>, %arg4: memref<1x512xf32, #tpu.memory_space<vmem>>, %arg5: memref<1x128xf32, #tpu.memory_space<vmem>>, %arg6: memref<1x1xf32, #tpu.memory_space<vmem>>, %arg7: memref<8x1xf32, #tpu.memory_space<vmem>>, %arg8: memref<8x8x512xf32, #tpu.memory_space<vmem>>) attributes {dimension_semantics = [#tpu.dimension_semantics<parallel>], iteration_bounds = array<i64: 1>, scalar_prefetch = 0 : i64, scratch_operands = 1 : i64, tpu.core_type = #tpu.core_type<tc>, window_params = [{transform_indices = @transform_0, window_bounds = array<i64: 8, 8>}, {pipeline_mode = #tpu.pipeline_mode<synchronous>, transform_indices = @transform_1, window_bounds = array<i64: 128, 512>}, {pipeline_mode = #tpu.pipeline_mode<synchronous>, transform_indices = @transform_2, window_bounds = array<i64: 1, 512>}, {pipeline_mode = #tpu.pipeline_mode<synchronous>, transform_indices = @transform_3, window_bounds = array<i64: 1, 512>}, {pipeline_mode = #tpu.pipeline_mode<synchronous>, transform_indices = @transform_4, window_bounds = array<i64: 1, 128>}, {pipeline_mode = #tpu.pipeline_mode<synchronous>, transform_indices = @transform_5, window_bounds = array<i64: 1, 1>}, {transform_indices = @transform_6, window_bounds = array<i64: 8, 1>}]} {
    %c0 = arith.constant 0 : index
    %c0_0 = arith.constant 0 : index
    %0 = vector.load %arg1[%c0, %c0_0] : memref<8x8xf32, #tpu.memory_space<vmem>>, vector<8x8xf32>
    %1 = vector.shape_cast %0 : vector<8x8xf32> to vector<8x8x1xf32>
    %c0_1 = arith.constant 0 : index
    %c0_2 = arith.constant 0 : index
    %2 = vector.load %arg3[%c0_1, %c0_2] : memref<1x512xf32, #tpu.memory_space<vmem>>, vector<1x512xf32>
    %3 = vector.shape_cast %2 : vector<1x512xf32> to vector<1x1x512xf32>
    %4 = vector.broadcast %1 : vector<8x8x1xf32> to vector<8x8x512xf32>
    %5 = vector.broadcast %3 : vector<1x1x512xf32> to vector<8x8x512xf32>
    %6 = arith.mulf %4, %5 : vector<8x8x512xf32>
    %c0_3 = arith.constant 0 : index
    %c0_4 = arith.constant 0 : index
    %7 = vector.load %arg4[%c0_3, %c0_4] : memref<1x512xf32, #tpu.memory_space<vmem>>, vector<1x512xf32>
    %8 = vector.shape_cast %7 : vector<1x512xf32> to vector<1x1x512xf32>
    %9 = vector.broadcast %8 : vector<1x1x512xf32> to vector<8x8x512xf32>
    %10 = arith.addf %6, %9 : vector<8x8x512xf32>
    %c0_5 = arith.constant 0 : index
    %c0_6 = arith.constant 0 : index
    %c0_7 = arith.constant 0 : index
    %11 = vector.load %arg8[%c0_5, %c0_6, %c0_7] : memref<8x8x512xf32, #tpu.memory_space<vmem>>, vector<8x8x512xf32>
    tpu.vector_store %arg8[%c0_5, %c0_6, %c0_7], %10 {strides = array<i32>} : memref<8x8x512xf32, #tpu.memory_space<vmem>>, vector<8x8x512xf32>,
    %c0_8 = arith.constant 0 : index
    %c0_9 = arith.constant 0 : index
    %12 = vector.load %arg2[%c0_8, %c0_9] : memref<128x512xf32, #tpu.memory_space<vmem>>, vector<128x512xf32>
    %cst = arith.constant 0.000000e+00 : f32
    %13 = vector.broadcast %cst : f32 to vector<8x128xf32>
    %cst_10 = arith.constant 0.000000e+00 : f32
    %14 = vector.broadcast %cst_10 : f32 to vector<8x128xf32>
    %c0_i32 = arith.constant 0 : i32
    %15 = arith.index_cast %c0_i32 : i32 to index
    %c0_11 = arith.constant 0 : index
    %c0_12 = arith.constant 0 : index
    %16 = vector.load %arg8[%15, %c0_11, %c0_12] : memref<8x8x512xf32, #tpu.memory_space<vmem>>, vector<1x8x512xf32>
    %17 = vector.shape_cast %16 : vector<1x8x512xf32> to vector<8x512xf32>
    %cst_13 = arith.constant dense<0.000000e+00> : vector<8x512xf32>
    %18 = tpu.matmul %13, %12, %cst_13 {dimension_numbers = #tpu.dot_dimension_numbers<[1], [0], [0], [1], [0, 0, 1, 1], [], []>} : vector<8x128xf32>, vector<128x512xf32>, vector<8x512xf32> -> vector<8x512xf32>
    %19 = arith.addf %17, %18 : vector<8x512xf32>
    %20 = math.tanh %19 : vector<8x512xf32>
    %21 = vector.extract_strided_slice %20 {offsets = [0, 0], sizes = [8, 384], strides = [1, 1]} : vector<8x512xf32> to vector<8x384xf32>
    %cst_14 = arith.constant 5.000000e-01 : f32
    %22 = vector.broadcast %cst_14 : f32 to vector<8x384xf32>
    %23 = arith.mulf %22, %21 : vector<8x384xf32>
    %cst_15 = arith.constant 5.000000e-01 : f32
    %24 = vector.broadcast %cst_15 : f32 to vector<8x384xf32>
    %25 = arith.addf %23, %24 : vector<8x384xf32>
    %26 = vector.extract_strided_slice %20 {offsets = [0, 384], sizes = [8, 128], strides = [1, 1]} : vector<8x512xf32> to vector<8x128xf32>
    %27 = vector.extract_strided_slice %25 {offsets = [0, 0], sizes = [8, 128], strides = [1, 1]} : vector<8x384xf32> to vector<8x128xf32>
    %28 = vector.extract_strided_slice %25 {offsets = [0, 128], sizes = [8, 128], strides = [1, 1]} : vector<8x384xf32> to vector<8x128xf32>
    %29 = vector.extract_strided_slice %25 {offsets = [0, 256], sizes = [8, 128], strides = [1, 1]} : vector<8x384xf32> to vector<8x128xf32>
    %30 = arith.mulf %28, %14 : vector<8x128xf32>
    %31 = arith.mulf %27, %26 : vector<8x128xf32>
    %32 = arith.addf %30, %31 : vector<8x128xf32>
    %33 = math.tanh %32 : vector<8x128xf32>
    %34 = arith.mulf %29, %33 : vector<8x128xf32>
    %c1_i32 = arith.constant 1 : i32
    %35 = arith.index_cast %c1_i32 : i32 to index
    %c0_16 = arith.constant 0 : index
    %c0_17 = arith.constant 0 : index
    %36 = vector.load %arg8[%35, %c0_16, %c0_17] : memref<8x8x512xf32, #tpu.memory_space<vmem>>, vector<1x8x512xf32>
    %37 = vector.shape_cast %36 : vector<1x8x512xf32> to vector<8x512xf32>
    %cst_18 = arith.constant dense<0.000000e+00> : vector<8x512xf32>
    %38 = tpu.matmul %34, %12, %cst_18 {dimension_numbers = #tpu.dot_dimension_numbers<[1], [0], [0], [1], [0, 0, 1, 1], [], []>} : vector<8x128xf32>, vector<128x512xf32>, vector<8x512xf32> -> vector<8x512xf32>
    %39 = arith.addf %37, %38 : vector<8x512xf32>
    %40 = math.tanh %39 : vector<8x512xf32>
    %41 = vector.extract_strided_slice %40 {offsets = [0, 0], sizes = [8, 384], strides = [1, 1]} : vector<8x512xf32> to vector<8x384xf32>
    %cst_19 = arith.constant 5.000000e-01 : f32
    %42 = vector.broadcast %cst_19 : f32 to vector<8x384xf32>
    %43 = arith.mulf %42, %41 : vector<8x384xf32>
    %cst_20 = arith.constant 5.000000e-01 : f32
    %44 = vector.broadcast %cst_20 : f32 to vector<8x384xf32>
    %45 = arith.addf %43, %44 : vector<8x384xf32>
    %46 = vector.extract_strided_slice %40 {offsets = [0, 384], sizes = [8, 128], strides = [1, 1]} : vector<8x512xf32> to vector<8x128xf32>
    %47 = vector.extract_strided_slice %45 {offsets = [0, 0], sizes = [8, 128], strides = [1, 1]} : vector<8x384xf32> to vector<8x128xf32>
    %48 = vector.extract_strided_slice %45 {offsets = [0, 128], sizes = [8, 128], strides = [1, 1]} : vector<8x384xf32> to vector<8x128xf32>
    %49 = vector.extract_strided_slice %45 {offsets = [0, 256], sizes = [8, 128], strides = [1, 1]} : vector<8x384xf32> to vector<8x128xf32>
    %50 = arith.mulf %48, %32 : vector<8x128xf32>
    %51 = arith.mulf %47, %46 : vector<8x128xf32>
    %52 = arith.addf %50, %51 : vector<8x128xf32>
    %53 = math.tanh %52 : vector<8x128xf32>
    %54 = arith.mulf %49, %53 : vector<8x128xf32>
    %c2_i32 = arith.constant 2 : i32
    %55 = arith.index_cast %c2_i32 : i32 to index
    %c0_21 = arith.constant 0 : index
    %c0_22 = arith.constant 0 : index
    %56 = vector.load %arg8[%55, %c0_21, %c0_22] : memref<8x8x512xf32, #tpu.memory_space<vmem>>, vector<1x8x512xf32>
    %57 = vector.shape_cast %56 : vector<1x8x512xf32> to vector<8x512xf32>
    %cst_23 = arith.constant dense<0.000000e+00> : vector<8x512xf32>
    %58 = tpu.matmul %54, %12, %cst_23 {dimension_numbers = #tpu.dot_dimension_numbers<[1], [0], [0], [1], [0, 0, 1, 1], [], []>} : vector<8x128xf32>, vector<128x512xf32>, vector<8x512xf32> -> vector<8x512xf32>
    %59 = arith.addf %57, %58 : vector<8x512xf32>
    %60 = math.tanh %59 : vector<8x512xf32>
    %61 = vector.extract_strided_slice %60 {offsets = [0, 0], sizes = [8, 384], strides = [1, 1]} : vector<8x512xf32> to vector<8x384xf32>
    %cst_24 = arith.constant 5.000000e-01 : f32
    %62 = vector.broadcast %cst_24 : f32 to vector<8x384xf32>
    %63 = arith.mulf %62, %61 : vector<8x384xf32>
    %cst_25 = arith.constant 5.000000e-01 : f32
    %64 = vector.broadcast %cst_25 : f32 to vector<8x384xf32>
    %65 = arith.addf %63, %64 : vector<8x384xf32>
    %66 = vector.extract_strided_slice %60 {offsets = [0, 384], sizes = [8, 128], strides = [1, 1]} : vector<8x512xf32> to vector<8x128xf32>
    %67 = vector.extract_strided_slice %65 {offsets = [0, 0], sizes = [8, 128], strides = [1, 1]} : vector<8x384xf32> to vector<8x128xf32>
    %68 = vector.extract_strided_slice %65 {offsets = [0, 128], sizes = [8, 128], strides = [1, 1]} : vector<8x384xf32> to vector<8x128xf32>
    %69 = vector.extract_strided_slice %65 {offsets = [0, 256], sizes = [8, 128], strides = [1, 1]} : vector<8x384xf32> to vector<8x128xf32>
    %70 = arith.mulf %68, %52 : vector<8x128xf32>
    %71 = arith.mulf %67, %66 : vector<8x128xf32>
    %72 = arith.addf %70, %71 : vector<8x128xf32>
    %73 = math.tanh %72 : vector<8x128xf32>
    %74 = arith.mulf %69, %73 : vector<8x128xf32>
    %c3_i32 = arith.constant 3 : i32
    %75 = arith.index_cast %c3_i32 : i32 to index
    %c0_26 = arith.constant 0 : index
    %c0_27 = arith.constant 0 : index
    %76 = vector.load %arg8[%75, %c0_26, %c0_27] : memref<8x8x512xf32, #tpu.memory_space<vmem>>, vector<1x8x512xf32>
    %77 = vector.shape_cast %76 : vector<1x8x512xf32> to vector<8x512xf32>
    %cst_28 = arith.constant dense<0.000000e+00> : vector<8x512xf32>
    %78 = tpu.matmul %74, %12, %cst_28 {dimension_numbers = #tpu.dot_dimension_numbers<[1], [0], [0], [1], [0, 0, 1, 1], [], []>} : vector<8x128xf32>, vector<128x512xf32>, vector<8x512xf32> -> vector<8x512xf32>
    %79 = arith.addf %77, %78 : vector<8x512xf32>
    %80 = math.tanh %79 : vector<8x512xf32>
    %81 = vector.extract_strided_slice %80 {offsets = [0, 0], sizes = [8, 384], strides = [1, 1]} : vector<8x512xf32> to vector<8x384xf32>
    %cst_29 = arith.constant 5.000000e-01 : f32
    %82 = vector.broadcast %cst_29 : f32 to vector<8x384xf32>
    %83 = arith.mulf %82, %81 : vector<8x384xf32>
    %cst_30 = arith.constant 5.000000e-01 : f32
    %84 = vector.broadcast %cst_30 : f32 to vector<8x384xf32>
    %85 = arith.addf %83, %84 : vector<8x384xf32>
    %86 = vector.extract_strided_slice %80 {offsets = [0, 384], sizes = [8, 128], strides = [1, 1]} : vector<8x512xf32> to vector<8x128xf32>
    %87 = vector.extract_strided_slice %85 {offsets = [0, 0], sizes = [8, 128], strides = [1, 1]} : vector<8x384xf32> to vector<8x128xf32>
    %88 = vector.extract_strided_slice %85 {offsets = [0, 128], sizes = [8, 128], strides = [1, 1]} : vector<8x384xf32> to vector<8x128xf32>
    %89 = vector.extract_strided_slice %85 {offsets = [0, 256], sizes = [8, 128], strides = [1, 1]} : vector<8x384xf32> to vector<8x128xf32>
    %90 = arith.mulf %88, %72 : vector<8x128xf32>
    %91 = arith.mulf %87, %86 : vector<8x128xf32>
    %92 = arith.addf %90, %91 : vector<8x128xf32>
    %93 = math.tanh %92 : vector<8x128xf32>
    %94 = arith.mulf %89, %93 : vector<8x128xf32>
    %c4_i32 = arith.constant 4 : i32
    %95 = arith.index_cast %c4_i32 : i32 to index
    %c0_31 = arith.constant 0 : index
    %c0_32 = arith.constant 0 : index
    %96 = vector.load %arg8[%95, %c0_31, %c0_32] : memref<8x8x512xf32, #tpu.memory_space<vmem>>, vector<1x8x512xf32>
    %97 = vector.shape_cast %96 : vector<1x8x512xf32> to vector<8x512xf32>
    %cst_33 = arith.constant dense<0.000000e+00> : vector<8x512xf32>
    %98 = tpu.matmul %94, %12, %cst_33 {dimension_numbers = #tpu.dot_dimension_numbers<[1], [0], [0], [1], [0, 0, 1, 1], [], []>} : vector<8x128xf32>, vector<128x512xf32>, vector<8x512xf32> -> vector<8x512xf32>
    %99 = arith.addf %97, %98 : vector<8x512xf32>
    %100 = math.tanh %99 : vector<8x512xf32>
    %101 = vector.extract_strided_slice %100 {offsets = [0, 0], sizes = [8, 384], strides = [1, 1]} : vector<8x512xf32> to vector<8x384xf32>
    %cst_34 = arith.constant 5.000000e-01 : f32
    %102 = vector.broadcast %cst_34 : f32 to vector<8x384xf32>
    %103 = arith.mulf %102, %101 : vector<8x384xf32>
    %cst_35 = arith.constant 5.000000e-01 : f32
    %104 = vector.broadcast %cst_35 : f32 to vector<8x384xf32>
    %105 = arith.addf %103, %104 : vector<8x384xf32>
    %106 = vector.extract_strided_slice %100 {offsets = [0, 384], sizes = [8, 128], strides = [1, 1]} : vector<8x512xf32> to vector<8x128xf32>
    %107 = vector.extract_strided_slice %105 {offsets = [0, 0], sizes = [8, 128], strides = [1, 1]} : vector<8x384xf32> to vector<8x128xf32>
    %108 = vector.extract_strided_slice %105 {offsets = [0, 128], sizes = [8, 128], strides = [1, 1]} : vector<8x384xf32> to vector<8x128xf32>
    %109 = vector.extract_strided_slice %105 {offsets = [0, 256], sizes = [8, 128], strides = [1, 1]} : vector<8x384xf32> to vector<8x128xf32>
    %110 = arith.mulf %108, %92 : vector<8x128xf32>
    %111 = arith.mulf %107, %106 : vector<8x128xf32>
    %112 = arith.addf %110, %111 : vector<8x128xf32>
    %113 = math.tanh %112 : vector<8x128xf32>
    %114 = arith.mulf %109, %113 : vector<8x128xf32>
    %c5_i32 = arith.constant 5 : i32
    %115 = arith.index_cast %c5_i32 : i32 to index
    %c0_36 = arith.constant 0 : index
    %c0_37 = arith.constant 0 : index
    %116 = vector.load %arg8[%115, %c0_36, %c0_37] : memref<8x8x512xf32, #tpu.memory_space<vmem>>, vector<1x8x512xf32>
    %117 = vector.shape_cast %116 : vector<1x8x512xf32> to vector<8x512xf32>
    %cst_38 = arith.constant dense<0.000000e+00> : vector<8x512xf32>
    %118 = tpu.matmul %114, %12, %cst_38 {dimension_numbers = #tpu.dot_dimension_numbers<[1], [0], [0], [1], [0, 0, 1, 1], [], []>} : vector<8x128xf32>, vector<128x512xf32>, vector<8x512xf32> -> vector<8x512xf32>
    %119 = arith.addf %117, %118 : vector<8x512xf32>
    %120 = math.tanh %119 : vector<8x512xf32>
    %121 = vector.extract_strided_slice %120 {offsets = [0, 0], sizes = [8, 384], strides = [1, 1]} : vector<8x512xf32> to vector<8x384xf32>
    %cst_39 = arith.constant 5.000000e-01 : f32
    %122 = vector.broadcast %cst_39 : f32 to vector<8x384xf32>
    %123 = arith.mulf %122, %121 : vector<8x384xf32>
    %cst_40 = arith.constant 5.000000e-01 : f32
    %124 = vector.broadcast %cst_40 : f32 to vector<8x384xf32>
    %125 = arith.addf %123, %124 : vector<8x384xf32>
    %126 = vector.extract_strided_slice %120 {offsets = [0, 384], sizes = [8, 128], strides = [1, 1]} : vector<8x512xf32> to vector<8x128xf32>
    %127 = vector.extract_strided_slice %125 {offsets = [0, 0], sizes = [8, 128], strides = [1, 1]} : vector<8x384xf32> to vector<8x128xf32>
    %128 = vector.extract_strided_slice %125 {offsets = [0, 128], sizes = [8, 128], strides = [1, 1]} : vector<8x384xf32> to vector<8x128xf32>
    %129 = vector.extract_strided_slice %125 {offsets = [0, 256], sizes = [8, 128], strides = [1, 1]} : vector<8x384xf32> to vector<8x128xf32>
    %130 = arith.mulf %128, %112 : vector<8x128xf32>
    %131 = arith.mulf %127, %126 : vector<8x128xf32>
    %132 = arith.addf %130, %131 : vector<8x128xf32>
    %133 = math.tanh %132 : vector<8x128xf32>
    %134 = arith.mulf %129, %133 : vector<8x128xf32>
    %c6_i32 = arith.constant 6 : i32
    %135 = arith.index_cast %c6_i32 : i32 to index
    %c0_41 = arith.constant 0 : index
    %c0_42 = arith.constant 0 : index
    %136 = vector.load %arg8[%135, %c0_41, %c0_42] : memref<8x8x512xf32, #tpu.memory_space<vmem>>, vector<1x8x512xf32>
    %137 = vector.shape_cast %136 : vector<1x8x512xf32> to vector<8x512xf32>
    %cst_43 = arith.constant dense<0.000000e+00> : vector<8x512xf32>
    %138 = tpu.matmul %134, %12, %cst_43 {dimension_numbers = #tpu.dot_dimension_numbers<[1], [0], [0], [1], [0, 0, 1, 1], [], []>} : vector<8x128xf32>, vector<128x512xf32>, vector<8x512xf32> -> vector<8x512xf32>
    %139 = arith.addf %137, %138 : vector<8x512xf32>
    %140 = math.tanh %139 : vector<8x512xf32>
    %141 = vector.extract_strided_slice %140 {offsets = [0, 0], sizes = [8, 384], strides = [1, 1]} : vector<8x512xf32> to vector<8x384xf32>
    %cst_44 = arith.constant 5.000000e-01 : f32
    %142 = vector.broadcast %cst_44 : f32 to vector<8x384xf32>
    %143 = arith.mulf %142, %141 : vector<8x384xf32>
    %cst_45 = arith.constant 5.000000e-01 : f32
    %144 = vector.broadcast %cst_45 : f32 to vector<8x384xf32>
    %145 = arith.addf %143, %144 : vector<8x384xf32>
    %146 = vector.extract_strided_slice %140 {offsets = [0, 384], sizes = [8, 128], strides = [1, 1]} : vector<8x512xf32> to vector<8x128xf32>
    %147 = vector.extract_strided_slice %145 {offsets = [0, 0], sizes = [8, 128], strides = [1, 1]} : vector<8x384xf32> to vector<8x128xf32>
    %148 = vector.extract_strided_slice %145 {offsets = [0, 128], sizes = [8, 128], strides = [1, 1]} : vector<8x384xf32> to vector<8x128xf32>
    %149 = vector.extract_strided_slice %145 {offsets = [0, 256], sizes = [8, 128], strides = [1, 1]} : vector<8x384xf32> to vector<8x128xf32>
    %150 = arith.mulf %148, %132 : vector<8x128xf32>
    %151 = arith.mulf %147, %146 : vector<8x128xf32>
    %152 = arith.addf %150, %151 : vector<8x128xf32>
    %153 = math.tanh %152 : vector<8x128xf32>
    %154 = arith.mulf %149, %153 : vector<8x128xf32>
    %c7_i32 = arith.constant 7 : i32
    %155 = arith.index_cast %c7_i32 : i32 to index
    %c0_46 = arith.constant 0 : index
    %c0_47 = arith.constant 0 : index
    %156 = vector.load %arg8[%155, %c0_46, %c0_47] : memref<8x8x512xf32, #tpu.memory_space<vmem>>, vector<1x8x512xf32>
    %157 = vector.shape_cast %156 : vector<1x8x512xf32> to vector<8x512xf32>
    %cst_48 = arith.constant dense<0.000000e+00> : vector<8x512xf32>
    %158 = tpu.matmul %154, %12, %cst_48 {dimension_numbers = #tpu.dot_dimension_numbers<[1], [0], [0], [1], [0, 0, 1, 1], [], []>} : vector<8x128xf32>, vector<128x512xf32>, vector<8x512xf32> -> vector<8x512xf32>
    %159 = arith.addf %157, %158 : vector<8x512xf32>
    %160 = math.tanh %159 : vector<8x512xf32>
    %161 = vector.extract_strided_slice %160 {offsets = [0, 0], sizes = [8, 384], strides = [1, 1]} : vector<8x512xf32> to vector<8x384xf32>
    %cst_49 = arith.constant 5.000000e-01 : f32
    %162 = vector.broadcast %cst_49 : f32 to vector<8x384xf32>
    %163 = arith.mulf %162, %161 : vector<8x384xf32>
    %cst_50 = arith.constant 5.000000e-01 : f32
    %164 = vector.broadcast %cst_50 : f32 to vector<8x384xf32>
    %165 = arith.addf %163, %164 : vector<8x384xf32>
    %166 = vector.extract_strided_slice %160 {offsets = [0, 384], sizes = [8, 128], strides = [1, 1]} : vector<8x512xf32> to vector<8x128xf32>
    %167 = vector.extract_strided_slice %165 {offsets = [0, 0], sizes = [8, 128], strides = [1, 1]} : vector<8x384xf32> to vector<8x128xf32>
    %168 = vector.extract_strided_slice %165 {offsets = [0, 128], sizes = [8, 128], strides = [1, 1]} : vector<8x384xf32> to vector<8x128xf32>
    %169 = vector.extract_strided_slice %165 {offsets = [0, 256], sizes = [8, 128], strides = [1, 1]} : vector<8x384xf32> to vector<8x128xf32>
    %170 = arith.mulf %168, %152 : vector<8x128xf32>
    %171 = arith.mulf %167, %166 : vector<8x128xf32>
    %172 = arith.addf %170, %171 : vector<8x128xf32>
    %173 = math.tanh %172 : vector<8x128xf32>
    %174 = arith.mulf %169, %173 : vector<8x128xf32>
    %c8_i32 = arith.constant 8 : i32
    %c0_51 = arith.constant 0 : index
    %c0_52 = arith.constant 0 : index
    %175 = vector.load %arg5[%c0_51, %c0_52] : memref<1x128xf32, #tpu.memory_space<vmem>>, vector<1x128xf32>
    %176 = vector.broadcast %175 : vector<1x128xf32> to vector<8x128xf32>
    %177 = arith.mulf %174, %176 : vector<8x128xf32>
    %cst_53 = arith.constant dense<0.000000e+00> : vector<8xf32>
    %178 = vector.multi_reduction <add>, %177, %cst_53 [1] : vector<8x128xf32> to vector<8xf32>
    %179 = vector.shape_cast %178 : vector<8xf32> to vector<8x1xf32>
    %c0_54 = arith.constant 0 : index
    %c0_55 = arith.constant 0 : index
    %180 = vector.load %arg6[%c0_54, %c0_55] : memref<1x1xf32, #tpu.memory_space<vmem>>, vector<1x1xf32>
    %181 = vector.broadcast %180 : vector<1x1xf32> to vector<8x1xf32>
    %182 = arith.addf %179, %181 : vector<8x1xf32>
    %c0_56 = arith.constant 0 : index
    %c0_57 = arith.constant 0 : index
    %183 = vector.load %arg7[%c0_56, %c0_57] : memref<8x1xf32, #tpu.memory_space<vmem>>, vector<8x1xf32>
    tpu.vector_store %arg7[%c0_56, %c0_57], %182 {strides = array<i32>} : memref<8x1xf32, #tpu.memory_space<vmem>>, vector<8x1xf32>,
    return
  }
  func.func @transform_0(%arg0: i32) -> (i32, i32) {
    %c0_i32 = arith.constant 0 : i32
    %c0_i32_0 = arith.constant 0 : i32
    return %c0_i32, %arg0 : i32, i32
  }
  func.func @transform_1(%arg0: i32) -> (i32, i32) {
    %c0_i32 = arith.constant 0 : i32
    %c0_i32_0 = arith.constant 0 : i32
    %c0_i32_1 = arith.constant 0 : i32
    return %c0_i32, %c0_i32_0 : i32, i32
  }
  func.func @transform_2(%arg0: i32) -> (i32, i32) {
    %c0_i32 = arith.constant 0 : i32
    %c0_i32_0 = arith.constant 0 : i32
    %c0_i32_1 = arith.constant 0 : i32
    return %c0_i32, %c0_i32_0 : i32, i32
  }
  func.func @transform_3(%arg0: i32) -> (i32, i32) {
    %c0_i32 = arith.constant 0 : i32
    %c0_i32_0 = arith.constant 0 : i32
    %c0_i32_1 = arith.constant 0 : i32
    return %c0_i32, %c0_i32_0 : i32, i32
  }
  func.func @transform_4(%arg0: i32) -> (i32, i32) {
    %c0_i32 = arith.constant 0 : i32
    %c0_i32_0 = arith.constant 0 : i32
    %c0_i32_1 = arith.constant 0 : i32
    return %c0_i32, %c0_i32_0 : i32, i32
  }
  func.func @transform_5(%arg0: i32) -> (i32, i32) {
    %c0_i32 = arith.constant 0 : i32
    %c0_i32_0 = arith.constant 0 : i32
    %c0_i32_1 = arith.constant 0 : i32
    return %c0_i32, %c0_i32_0 : i32, i32
  }
  func.func @transform_6(%arg0: i32) -> (i32, i32) {
    %c0_i32 = arith.constant 0 : i32
    %c0_i32_0 = arith.constant 0 : i32
    return %arg0, %c0_i32 : i32, i32
  }
}

</mosaic_0001>

<bundles_post_ra>
// kernel: lstm_forward.1
= control target key start
LH: loop header
LB: loop body
LE: loop exit
PB: predicated region body
PF: predicated region fallthrough
CT: control target
= control target key end

     0   :  { %s2815_s0 = inlined_call_operand.vmem [shape: f32[8,8], index: 0, kind: input, shape index: {}]   ;;  %s2816_s1 = inlined_call_operand.hbm [shape: f32[128,512], index: 1, kind: input, shape index: {}]   ;;  %s2817_s2 = inlined_call_operand.vmem [shape: f32[1,512], index: 2, kind: input, shape index: {}]   ;;  %s2818_s3 = inlined_call_operand.vmem [shape: f32[1,512], index: 3, kind: input, shape index: {}]   ;;  %s2819_s4 = inlined_call_operand.vmem [shape: f32[1,128], index: 4, kind: input, shape index: {}]   ;;  %s2820_s5 = inlined_call_operand.<no memory space> [shape: f32[1,1], index: 5, kind: input, shape index: {}]   ;;  %s2821_s6 = inlined_call_operand.vmem [shape: f32[8,1], index: 6, kind: output, shape index: {}]  }
   0x1   :  { %v11_v0 = vstv %s2820_s5 }
   0x2   :  { %12 = vst [vmem:[#allocation3] sm:$0x1] %v11_v0 }
   0x3   :  { %13 = vsyncpa [#allocation5], 0  ;;  %s1825_s23 = smov [#allocation4]  }
   0x4   :  { %s21_s24 = sshll.u32 %s1825_s23, 4  ;;  %s22_s24 = int_to_ptr.vmem [resolvable:$true] %s21_s24 }
   0x5   :  { %s1811_s25 = scalar_lea.vmem %s22_s24, 8192  ;;  %p1816_p1 = scmp.lt.s32.totalorder %s22_s24, %s22_s24 }
   0x6   :  { %p1812_p0 = scmp.ne.s32.totalorder %s22_s24, %s1811_s25  ;;  %p1817_p2 = scmp.lt.s32.totalorder %s1811_s25, %s1811_s25 }
   0x8   :  { %p1818_p3 = por %p1817_p2, %p1816_p1 }
   0xa   :  { %p1819_p4 = pnand %p1818_p3, %p1812_p0 }
   0xc   :  { %1822 = shalt.err (!%p1819_p4)
}
   0xd   :  { %s1826_s26 = smov 512   ;;  %s1827_s27 = smov 32  }
   0xe   :  { %27 = dma.hbm_to_vmem [thread:$0]  %s2816_s1, 8192, %s22_s24, [#allocation5], %s1826_s26, %s1826_s26, %s1827_s27  }
   0xf   :  { %1823 = dma.done.wait [#allocation5], 8192  }
  0x10   :  { %1824 = vsyncadd [#allocation5], 4294959104  ;;  %v2822_v1 = vmov 0.0   ;;  %v1872_v2 = vld [vmem:[#allocation4 + $0x1e8] sm:$0xff]  ;;  %v1874_v3 = vld [vmem:[#allocation4 + $0x1f8] sm:$0xff]  ;;  %v40_v44 = vlaneseq  ;;  %vm1645_vm0 = vcmask 7168  }
  0x11   :  { %368 = vmatprep.mubr.f32.mxu0 %v2822_v1  ;;  %439 = vmatprep.mubr.f32.mxu1 %v2822_v1  ;;  %2948 = vst [vmem:[#allocation7_spill] sm:$0xff] %v1872_v2  ;;  %2949 = vst [vmem:[#allocation8_spill] sm:$0xff] %v1874_v3  ;;  %v1876_v4 = vld [vmem:[#allocation4 + $0x1e0] sm:$0xff]  ;;  %v1880_v5 = vld [vmem:[#allocation4 + $0x1f0] sm:$0xff] }
  0x12   :  { %304 = vmatprep.subr.mxu0 %v1872_v2  ;;  %375 = vmatprep.subr.mxu1 %v1874_v3  ;;  %v1882_v6 = vld [vmem:[#allocation4 + $0x1c8] sm:$0xff]  ;;  %v1884_v7 = vld [vmem:[#allocation4 + $0x1d8] sm:$0xff]  ;;  %v1888_v8 = vld [vmem:[#allocation4 + $0x1c0] sm:$0xff]  ;;  %v2016_v53 = vshrl.u32 %v40_v44, 7 }
  0x13   :  { %305 = vmatpush1.msra.mxu0 %v1876_v4  ;;  %376 = vmatpush1.msra.mxu1 %v1880_v5  ;;  %v1890_v9 = vld [vmem:[#allocation4 + $0x1d0] sm:$0xff]  ;;  %v1892_v10 = vld [vmem:[#allocation4 + $0x1a8] sm:$0xff]  ;;  %v1896_v11 = vld [vmem:[#allocation4 + $0x1b8] sm:$0xff] }
  0x14   :  { %306 = vmatprep.subr.mxu0 %v1882_v6  ;;  %377 = vmatprep.subr.mxu1 %v1884_v7  ;;  %v1898_v12 = vld [vmem:[#allocation4 + $0x1a0] sm:$0xff]  ;;  %v1900_v13 = vld [vmem:[#allocation4 + $0x1b0] sm:$0xff]  ;;  %v1904_v14 = vld [vmem:[#allocation4 + $0x188] sm:$0xff]  ;;  %2958 = vst [vmem:[#allocation17_spill] sm:$0xff] %v2016_v53  ;;  %v2043_v62 = vsub.s32 0, %v2016_v53 }
  0x15   :  { %307 = vmatpush1.msra.mxu0 %v1888_v8  ;;  %378 = vmatpush1.msra.mxu1 %v1890_v9  ;;  %v1906_v15 = vld [vmem:[#allocation4 + $0x198] sm:$0xff]  ;;  %v1910_v16 = vld [vmem:[#allocation4 + $0x180] sm:$0xff]  ;;  %v1912_v17 = vld [vmem:[#allocation4 + $0x190] sm:$0xff] }
  0x16   :  { %308 = vmatprep.subr.mxu0 %v1892_v10  ;;  %379 = vmatprep.subr.mxu1 %v1896_v11  ;;  %v1916_v18 = vld [vmem:[#allocation4 + $0x168] sm:$0xff]  ;;  %v1918_v19 = vld [vmem:[#allocation4 + $0x178] sm:$0xff]  ;;  %v1922_v20 = vld [vmem:[#allocation4 + $0x160] sm:$0xff] }
  0x17   :  { %309 = vmatpush1.msra.mxu0 %v1898_v12  ;;  %380 = vmatpush1.msra.mxu1 %v1900_v13  ;;  %v1924_v21 = vld [vmem:[#allocation4 + $0x170] sm:$0xff]  ;;  %v1928_v22 = vld [vmem:[#allocation4 + $0x148] sm:$0xff]  ;;  %v1930_v23 = vld [vmem:[#allocation4 + $0x158] sm:$0xff] }
  0x18   :  { %310 = vmatprep.subr.mxu0 %v1904_v14  ;;  %381 = vmatprep.subr.mxu1 %v1906_v15  ;;  %v1934_v24 = vld [vmem:[#allocation4 + $0x140] sm:$0xff]  ;;  %v1936_v25 = vld [vmem:[#allocation4 + $0x150] sm:$0xff]  ;;  %v1940_v26 = vld [vmem:[#allocation4 + $0x128] sm:$0xff] }
  0x19   :  { %311 = vmatpush1.msra.mxu0 %v1910_v16  ;;  %382 = vmatpush1.msra.mxu1 %v1912_v17  ;;  %v1942_v27 = vld [vmem:[#allocation4 + $0x138] sm:$0xff]  ;;  %v1946_v28 = vld [vmem:[#allocation4 + $0x120] sm:$0xff]  ;;  %v1948_v29 = vld [vmem:[#allocation4 + $0x130] sm:$0xff] }
  0x1a   :  { %312 = vmatprep.subr.mxu0 %v1916_v18  ;;  %383 = vmatprep.subr.mxu1 %v1918_v19  ;;  %v1952_v30 = vld [vmem:[#allocation4 + $0x108] sm:$0xff]  ;;  %v1954_v31 = vld [vmem:[#allocation4 + $0x118] sm:$0xff]  ;;  %v1958_v32 = vld [vmem:[#allocation4 + $0x100] sm:$0xff] }
  0x1b   :  { %313 = vmatpush1.msra.mxu0 %v1922_v20  ;;  %384 = vmatpush1.msra.mxu1 %v1924_v21  ;;  %v1960_v33 = vld [vmem:[#allocation4 + $0x110] sm:$0xff]  ;;  %v1964_v34 = vld [vmem:[#allocation4 + $0xe8] sm:$0xff]  ;;  %v1966_v35 = vld [vmem:[#allocation4 + $0xf8] sm:$0xff] }
  0x1c   :  { %314 = vmatprep.subr.mxu0 %v1928_v22  ;;  %385 = vmatprep.subr.mxu1 %v1930_v23  ;;  %v1970_v36 = vld [vmem:[#allocation4 + $0xe0] sm:$0xff]  ;;  %v1972_v37 = vld [vmem:[#allocation4 + $0xf0] sm:$0xff]  ;;  %v1976_v38 = vld [vmem:[#allocation4 + $0xc8] sm:$0xff] }
  0x1d   :  { %315 = vmatpush1.msra.mxu0 %v1934_v24  ;;  %386 = vmatpush1.msra.mxu1 %v1936_v25  ;;  %v1978_v39 = vld [vmem:[#allocation4 + $0xd8] sm:$0xff]  ;;  %v1982_v40 = vld [vmem:[#allocation4 + $0xc0] sm:$0xff]  ;;  %v1984_v41 = vld [vmem:[#allocation4 + $0xd0] sm:$0xff] }
  0x1e   :  { %316 = vmatprep.subr.mxu0 %v1940_v26  ;;  %387 = vmatprep.subr.mxu1 %v1942_v27  ;;  %v1988_v42 = vld [vmem:[#allocation4 + $0xa8] sm:$0xff]  ;;  %v1990_v43 = vld [vmem:[#allocation4 + $0xb8] sm:$0xff]  ;;  %v1994_v45 = vld [vmem:[#allocation4 + $0xa0] sm:$0xff] }
  0x1f   :  { %317 = vmatpush1.msra.mxu0 %v1946_v28  ;;  %388 = vmatpush1.msra.mxu1 %v1948_v29  ;;  %2950 = vst [vmem:[#allocation9_spill] sm:$0xff] %v1994_v45  ;;  %v1996_v46 = vld [vmem:[#allocation4 + $0xb0] sm:$0xff]  ;;  %v2000_v47 = vld [vmem:[#allocation4 + $0x88] sm:$0xff]  ;;  %v2002_v48 = vld [vmem:[#allocation4 + $0x98] sm:$0xff] }
  0x20   :  { %318 = vmatprep.subr.mxu0 %v1952_v30  ;;  %389 = vmatprep.subr.mxu1 %v1954_v31  ;;  %2951 = vst [vmem:[#allocation10_spill] sm:$0xff] %v1996_v46  ;;  %2952 = vst [vmem:[#allocation11_spill] sm:$0xff] %v2000_v47  ;;  %v2006_v49 = vld [vmem:[#allocation4 + $0x80] sm:$0xff]  ;;  %v2008_v50 = vld [vmem:[#allocation4 + $0x90] sm:$0xff] }
  0x21   :  { %319 = vmatpush1.msra.mxu0 %v1958_v32  ;;  %390 = vmatpush1.msra.mxu1 %v1960_v33  ;;  %2953 = vst [vmem:[#allocation12_spill] sm:$0xff] %v2002_v48  ;;  %2954 = vst [vmem:[#allocation13_spill] sm:$0xff] %v2006_v49  ;;  %v2012_v51 = vld [vmem:[#allocation4 + $0x68] sm:$0xff]  ;;  %v2014_v52 = vld [vmem:[#allocation4 + $0x78] sm:$0xff] }
  0x22   :  { %320 = vmatprep.subr.mxu0 %v1964_v34  ;;  %391 = vmatprep.subr.mxu1 %v1966_v35  ;;  %2955 = vst [vmem:[#allocation14_spill] sm:$0xff] %v2008_v50  ;;  %2956 = vst [vmem:[#allocation15_spill] sm:$0xff] %v2012_v51  ;;  %v2020_v54 = vld [vmem:[#allocation4 + $0x60] sm:$0xff]  ;;  %v2022_v55 = vld [vmem:[#allocation4 + $0x70] sm:$0xff] }
  0x23   :  { %321 = vmatpush1.msra.mxu0 %v1970_v36  ;;  %392 = vmatpush1.msra.mxu1 %v1972_v37  ;;  %2957 = vst [vmem:[#allocation16_spill] sm:$0xff] %v2014_v52  ;;  %2959 = vst [vmem:[#allocation18_spill] sm:$0xff] %v2020_v54  ;;  %v2026_v56 = vld [vmem:[#allocation4 + $0x48] sm:$0xff]  ;;  %v2028_v57 = vld [vmem:[#allocation4 + $0x58] sm:$0xff] }
  0x24   :  { %322 = vmatprep.subr.mxu0 %v1976_v38  ;;  %393 = vmatprep.subr.mxu1 %v1978_v39  ;;  %2960 = vst [vmem:[#allocation19_spill] sm:$0xff] %v2022_v55  ;;  %2961 = vst [vmem:[#allocation20_spill] sm:$0xff] %v2026_v56  ;;  %v2032_v58 = vld [vmem:[#allocation4 + $0x40] sm:$0xff]  ;;  %v2034_v59 = vld [vmem:[#allocation4 + $0x50] sm:$0xff] }
  0x25   :  { %323 = vmatpush1.msra.mxu0 %v1982_v40  ;;  %394 = vmatpush1.msra.mxu1 %v1984_v41  ;;  %2962 = vst [vmem:[#allocation21_spill] sm:$0xff] %v2028_v57  ;;  %2963 = vst [vmem:[#allocation22_spill] sm:$0xff] %v2032_v58  ;;  %v2038_v60 = vld [vmem:[#allocation4 + $0x28] sm:$0xff]  ;;  %v2040_v61 = vld [vmem:[#allocation4 + $0x38] sm:$0xff] }
  0x26   :  { %324 = vmatprep.subr.mxu0 %v1988_v42  ;;  %395 = vmatprep.subr.mxu1 %v1990_v43  ;;  %2964 = vst [vmem:[#allocation23_spill] sm:$0xff] %v2034_v59  ;;  %2965 = vst [vmem:[#allocation24_spill] sm:$0xff] %v2038_v60  ;;  %v2047_v63 = vld [vmem:[#allocation4 + $0x20] sm:$0xff]  ;;  %v2049_v0 = vld [vmem:[#allocation4 + $0x30] sm:$0xff] }
  0x27   :  { %325 = vmatpush1.msra.mxu0 %v1994_v45  ;;  %396 = vmatpush1.msra.mxu1 %v1996_v46  ;;  %2966 = vst [vmem:[#allocation25_spill] sm:$0xff] %v2040_v61  ;;  %2967 = vst [vmem:[#allocation26_spill] sm:$0xff] %v2047_v63  ;;  %v2054_v44 = vld [vmem:[%s2815_s0] sm:$0xff]  ;;  %v2058_v1 = vld [vmem:[#allocation4 + $0x8] sm:$0xff] }
  0x28   :  { %326 = vmatprep.subr.mxu0 %v2000_v47  ;;  %397 = vmatprep.subr.mxu1 %v2002_v48  ;;  %2968 = vst [vmem:[#allocation27_spill] sm:$0xff] %v2049_v0  ;;  %2969 = vst [vmem:[#allocation28_spill] sm:$0xff] %v2054_v44  ;;  %v2060_v53 = vld [vmem:[#allocation4 + $0x18] sm:$0xff] }
  0x29   :  { %327 = vmatpush1.msra.mxu0 %v2006_v49  ;;  %398 = vmatpush1.msra.mxu1 %v2008_v50  ;;  %2970 = vst [vmem:[#allocation29_spill] sm:$0xff] %v2058_v1  ;;  %2971 = vst [vmem:[#allocation30_spill] sm:$0xff] %v2060_v53 }
  0x2a   :  { %328 = vmatprep.subr.mxu0 %v2012_v51  ;;  %399 = vmatprep.subr.mxu1 %v2014_v52 }
  0x2b   :  { %329 = vmatpush1.msra.mxu0 %v2020_v54  ;;  %400 = vmatpush1.msra.mxu1 %v2022_v55 }
  0x2c   :  { %330 = vmatprep.subr.mxu0 %v2026_v56  ;;  %401 = vmatprep.subr.mxu1 %v2028_v57  ;;  %v2064_v57 = vld [vmem:[#allocation4] sm:$0xff]  ;;  %v2066_v56 = vld [vmem:[#allocation4 + $0x10] sm:$0xff] }
  0x2d   :  { %331 = vmatpush1.msra.mxu0 %v2032_v58  ;;  %402 = vmatpush1.msra.mxu1 %v2034_v59  ;;  %2972 = vst [vmem:[#allocation31_spill] sm:$0xff] %v2064_v57  ;;  %2973 = vst [vmem:[#allocation32_spill] sm:$0xff] %v2066_v56  ;;  %v43_v58 = vrot.slane %v2054_v44, %v2043_v62 }
  0x2e   :  { %332 = vmatprep.subr.mxu0 %v2038_v60  ;;  %403 = vmatprep.subr.mxu1 %v2040_v61  ;;  %v2974_v61 = vmov 0.0  }
  0x2f   :  { %333 = vmatpush1.msra.mxu0 %v2047_v63  ;;  %404 = vmatpush1.msra.mxu1 %v2049_v0 }
  0x30   :  { %334 = vmatprep.subr.mxu0 %v2058_v1  ;;  %405 = vmatprep.subr.mxu1 %v2060_v53 }
  0x31   :  { %335 = vmatpush1.msra.mxu0 %v2064_v57  ;;  %406 = vmatpush1.msra.mxu1 %v2066_v56 }
  0x32   :  { %369 = vmatmul.mubr.f32.vlgmr.msra.gmra.mxu0 %v2974_v61  ;;  %440 = vmatmul.mubr.f32.vlgmr.msra.gmra.mxu1 %v2974_v61 }
  0x33   :  { %45 = vbcast.lane.b32.xlu0 %v43_v58, 256  ;;  %470 = vmatprep.subr.mxu0 %v1872_v2  ;;  %v2975_v58 = vld [vmem:[#allocation20_spill] sm:$0xff] }
  0x34   :  { %541 = vmatprep.subr.mxu1 %v1874_v3  ;;  %471 = vmatpush1.msra.mxu0 %v1876_v4 }
  0x35   :  { %542 = vmatpush1.msra.mxu1 %v1880_v5  ;;  %472 = vmatprep.subr.mxu0 %v1882_v6 }
  0x36   :  { %543 = vmatprep.subr.mxu1 %v1884_v7  ;;  %473 = vmatpush1.msra.mxu0 %v1888_v8 }
  0x37   :  { %544 = vmatpush1.msra.mxu1 %v1890_v9  ;;  %474 = vmatprep.subr.mxu0 %v1892_v10 }
  0x38   :  { %545 = vmatprep.subr.mxu1 %v1896_v11  ;;  %475 = vmatpush1.msra.mxu0 %v1898_v12 }
  0x39   :  { %546 = vmatpush1.msra.mxu1 %v1900_v13  ;;  %476 = vmatprep.subr.mxu0 %v1904_v14 }
  0x3a   :  { %547 = vmatprep.subr.mxu1 %v1906_v15  ;;  %477 = vmatpush1.msra.mxu0 %v1910_v16 }
  0x3b   :  { %548 = vmatpush1.msra.mxu1 %v1912_v17  ;;  %478 = vmatprep.subr.mxu0 %v1916_v18 }
  0x3c   :  { %549 = vmatprep.subr.mxu1 %v1918_v19  ;;  %479 = vmatpush1.msra.mxu0 %v1922_v20 }
  0x3d   :  { %550 = vmatpush1.msra.mxu1 %v1924_v21  ;;  %480 = vmatprep.subr.mxu0 %v1928_v22 }
  0x3e   :  { %551 = vmatprep.subr.mxu1 %v1930_v23  ;;  %481 = vmatpush1.msra.mxu0 %v1934_v24 }
  0x3f   :  { %552 = vmatpush1.msra.mxu1 %v1936_v25  ;;  %482 = vmatprep.subr.mxu0 %v1940_v26 }
  0x40   :  { %553 = vmatprep.subr.mxu1 %v1942_v27  ;;  %483 = vmatpush1.msra.mxu0 %v1946_v28 }
  0x41   :  { %554 = vmatpush1.msra.mxu1 %v1948_v29  ;;  %484 = vmatprep.subr.mxu0 %v1952_v30 }
  0x42   :  { %555 = vmatprep.subr.mxu1 %v1954_v31  ;;  %485 = vmatpush1.msra.mxu0 %v1958_v32 }
  0x43   :  { %556 = vmatpush1.msra.mxu1 %v1960_v33  ;;  %486 = vmatprep.subr.mxu0 %v1964_v34 }
  0x44   :  { %557 = vmatprep.subr.mxu1 %v1966_v35  ;;  %487 = vmatpush1.msra.mxu0 %v1970_v36 }
  0x45   :  { %558 = vmatpush1.msra.mxu1 %v1972_v37  ;;  %488 = vmatprep.subr.mxu0 %v1976_v38 }
  0x46   :  { %559 = vmatprep.subr.mxu1 %v1978_v39  ;;  %489 = vmatpush1.msra.mxu0 %v1982_v40 }
  0x47   :  { %560 = vmatpush1.msra.mxu1 %v1984_v41  ;;  %490 = vmatprep.subr.mxu0 %v1988_v42 }
  0x48   :  { %561 = vmatprep.subr.mxu1 %v1990_v43  ;;  %491 = vmatpush1.msra.mxu0 %v1994_v45  ;;  %v2976_v45 = vld [vmem:[#allocation21_spill] sm:$0xff] }
  0x49   :  { %562 = vmatpush1.msra.mxu1 %v1996_v46  ;;  %492 = vmatprep.subr.mxu0 %v2000_v47  ;;  %v2977_v46 = vld [vmem:[#allocation22_spill] sm:$0xff] }
  0x4a   :  { %563 = vmatprep.subr.mxu1 %v2002_v48  ;;  %493 = vmatpush1.msra.mxu0 %v2006_v49  ;;  %v2978_v49 = vld [vmem:[#allocation25_spill] sm:$0xff] }
  0x4b   :  { %564 = vmatpush1.msra.mxu1 %v2008_v50  ;;  %494 = vmatprep.subr.mxu0 %v2012_v51 }
  0x4c   :  { %565 = vmatprep.subr.mxu1 %v2014_v52  ;;  %495 = vmatpush1.msra.mxu0 %v2020_v54 }
  0x4d   :  { %566 = vmatpush1.msra.mxu1 %v2022_v55  ;;  %496 = vmatprep.subr.mxu0 %v2975_v58 }
  0x4e   :  { %567 = vmatprep.subr.mxu1 %v2976_v45  ;;  %497 = vmatpush1.msra.mxu0 %v2977_v46 }
  0x4f   :  { %568 = vmatpush1.msra.mxu1 %v2034_v59  ;;  %498 = vmatprep.subr.mxu0 %v2038_v60 }
  0x50   :  { %569 = vmatprep.subr.mxu1 %v2978_v49  ;;  %499 = vmatpush1.msra.mxu0 %v2047_v63  ;;  %v2979_v49 = vld [vmem:[#allocation17_spill] sm:$0xff] }
  0x51   :  { %570 = vmatpush1.msra.mxu1 %v2049_v0  ;;  %500 = vmatprep.subr.mxu0 %v2058_v1  ;;  %v49_v63 = vsub.s32 1, %v2979_v49  ;;  %v2178_v55 = vsub.s32 2, %v2979_v49 }
  0x52   :  { %571 = vmatprep.subr.mxu1 %v2060_v53  ;;  %501 = vmatpush1.msra.mxu0 %v2064_v57  ;;  %v96_v53 = vld [vmem:[%s2817_s2] sm:$0xf]  ;;  %v2152_v57 = vsub.s32 3, %v2979_v49 }
  0x53   :  { %534 = vmatprep.mubr.f32.mxu0 %v2974_v61  ;;  %572 = vmatpush1.msra.mxu1 %v2066_v56  ;;  %v50_v0 = vrot.slane %v2054_v44, %v49_v63  ;;  %v2155_v56 = vrot.slane %v96_v53, %v2043_v62 }
  0x54   :  { %605 = vmatprep.mubr.f32.mxu1 %v2974_v61  ;;  %636 = vmatprep.subr.mxu0 %v1872_v2  ;;  %2980 = vst [vmem:[#allocation33_spill] sm:$0xff] %v2152_v57  ;;  %v150_v2 = vld [vmem:[%s2818_s3] sm:$0xf]  ;;  %v2160_v61 = vrot.slane %v96_v53, %v49_v63  ;;  %v2163_v44 = vrot.slane %v96_v53, %v2152_v57 }
  0x55   :  { %707 = vmatprep.subr.mxu1 %v1874_v3  ;;  %52 = vbcast.lane.b32.xlu0 %v50_v0, 256  ;;  %2981 = vst [vmem:[#allocation34_spill] sm:$0xff] %v2155_v56  ;;  %v2166_v0 = vrot.slane %v150_v2, %v2043_v62  ;;  %v2169_v60 = vrot.slane %v150_v2, %v49_v63 }
  0x56   :  { %2982 = vst [vmem:[#allocation35_spill] sm:$0xff] %v2160_v61  ;;  %2983 = vst [vmem:[#allocation36_spill] sm:$0xff] %v2163_v44  ;;  %v2173_v46 = vrot.slane %v150_v2, %v2152_v57 }
  0x57   :  { %2984 = vst [vmem:[#allocation37_spill] sm:$0xff] %v2166_v0  ;;  %2985 = vst [vmem:[#allocation38_spill] sm:$0xff] %v2169_v60 }
  0x58   :  { %2986 = vst [vmem:[#allocation39_spill] sm:$0xff] %v2173_v46 }
  0xa5   :  { %v46_v3 = vpop.permute.xlu0 %45 }
  0xa6   :  { %v118_v1 = vmul.f32 %v2155_v56, %v46_v3  ;;  %v119_v59 = vmul.f32 %v2160_v61, %v46_v3  ;;  %v121_v58 = vmul.f32 %v2163_v44, %v46_v3  ;;  %v2183_v61 = vrot.slane %v96_v53, %v2178_v55 }
  0xa7   :  { %v2186_v44 = vrot.slane %v150_v2, %v2178_v55 }
  0xa8   :  { %v172_v45 = vadd.f32 %v2166_v0, %v118_v1  ;;  %v173_v54 = vadd.f32 %v2169_v60, %v119_v59  ;;  %v175_v63 = vadd.f32 %v2173_v46, %v121_v58  ;;  %v120_v49 = vmul.f32 %v2183_v61, %v46_v3 }
  0xaa   :  { %v174_v59 = vadd.f32 %v2186_v44, %v120_v49 }
  0xf2   :  { %v370_v62 = vpop.f32.mrf.mxu0  ;;  %v441_v52 = vpop.f32.mrf.mxu1 }
  0xf3   :  { %v446_v51 = vadd.f32 %v370_v62, %v172_v45  ;;  %v448_v45 = vadd.f32 %v441_v52, %v174_v59  ;;  %v2988_v52 = vld [vmem:[#allocation10_spill] sm:$0xff]  ;;  %v2992_v59 = vld [vmem:[#allocation16_spill] sm:$0xff] }
  0xf4   :  { %v372_v56 = vpop.f32.mrf.mxu0  ;;  %v443_v50 = vpop.f32.mrf.mxu1 }
  0xf5   :  { %1658 = vtanh.f32 %v446_v51  ;;  %v447_v57 = vadd.f32 %v372_v56, %v173_v54  ;;  %v449_v1 = vadd.f32 %v443_v50, %v175_v63 }
  0xf7   :  { %1660 = vtanh.f32 %v447_v57 }
  0xf8   :  { %1662 = vtanh.f32 %v449_v1  ;;  %v2991_v1 = vld [vmem:[#allocation15_spill] sm:$0xff] }
  0xf9   :  { %1664 = vtanh.f32 %v448_v45  ;;  %v2993_v45 = vld [vmem:[#allocation18_spill] sm:$0xff] }
 0x102   :  { %v1659_v62 = vpop.eup %1658 }
 0x103   :  { %v454_v58 = vmul.f32 0.5, %v1659_v62  ;;  %v2994_v62 = vld [vmem:[#allocation19_spill] sm:$0xff] }
 0x104   :  { %v1661_v46 = vpop.eup %1660 }
 0x105   :  { %v457_v60 = vadd.f32 0.5, %v454_v58  ;;  %v455_v53 = vmul.f32 0.5, %v1661_v46  ;;  %v1663_v51 = vpop.eup %1662  ;;  %v2987_v46 = vld [vmem:[#allocation9_spill] sm:$0xff]  ;;  %v2995_v58 = vld [vmem:[#allocation20_spill] sm:$0xff] }
 0x106   :  { %v1665_v2 = vpop.eup %1664 }
 0x107   :  { %v458_v0 = vadd.f32 0.5, %v455_v53  ;;  %v461_v56 = vmul.f32 %v1663_v51, %v457_v60  ;;  %v456_v3 = vmul.f32 0.5, %v1665_v2  ;;  %v2989_v60 = vld [vmem:[#allocation13_spill] sm:$0xff]  ;;  %v2997_v51 = vld [vmem:[#allocation22_spill] sm:$0xff] }
 0x108   :  { %v2996_v53 = vld [vmem:[#allocation21_spill] sm:$0xff] }
 0x109   :  { %v460_v54 = vmul.f32 0.0, %v458_v0  ;;  %v459_v57 = vadd.f32 0.5, %v456_v3  ;;  %v2990_v0 = vld [vmem:[#allocation14_spill] sm:$0xff]  ;;  %v3000_v2 = vld [vmem:[#allocation25_spill] sm:$0xff] }
 0x10a   :  { %v3001_v3 = vld [vmem:[#allocation26_spill] sm:$0xff] }
 0x10b   :  { %v2190_v50 = vadd.f32 %v461_v56, %v460_v54  ;;  %v2998_v54 = vld [vmem:[#allocation23_spill] sm:$0xff]  ;;  %v2999_v56 = vld [vmem:[#allocation24_spill] sm:$0xff] }
 0x10d   :  { %1666 = vtanh.f32 %v2190_v50 }
 0x11a   :  { %v1667_v63 = vpop.eup %1666 }
 0x11b   :  { %v464_v49 = vmul.f32 %v1667_v63, %v459_v57  ;;  %v3002_v57 = vld [vmem:[#allocation27_spill] sm:$0xff]  ;;  %v3003_v63 = vld [vmem:[#allocation29_spill] sm:$0xff] }
 0x11d   :  { %535 = vmatmul.mubr.f32.vlgmr.msra.gmra.mxu0 %v464_v49  ;;  %606 = vmatmul.mubr.f32.vlgmr.msra.gmra.mxu1 %v464_v49  ;;  %v3004_v49 = vld [vmem:[#allocation30_spill] sm:$0xff] }
 0x11e   :  { %637 = vmatpush1.msra.mxu0 %v1876_v4  ;;  %708 = vmatpush1.msra.mxu1 %v1880_v5 }
 0x11f   :  { %638 = vmatprep.subr.mxu0 %v1882_v6  ;;  %709 = vmatprep.subr.mxu1 %v1884_v7 }
 0x120   :  { %639 = vmatpush1.msra.mxu0 %v1888_v8  ;;  %710 = vmatpush1.msra.mxu1 %v1890_v9 }
 0x121   :  { %640 = vmatprep.subr.mxu0 %v1892_v10  ;;  %711 = vmatprep.subr.mxu1 %v1896_v11 }
 0x122   :  { %641 = vmatpush1.msra.mxu0 %v1898_v12  ;;  %712 = vmatpush1.msra.mxu1 %v1900_v13 }
 0x123   :  { %642 = vmatprep.subr.mxu0 %v1904_v14  ;;  %713 = vmatprep.subr.mxu1 %v1906_v15 }
 0x124   :  { %643 = vmatpush1.msra.mxu0 %v1910_v16  ;;  %714 = vmatpush1.msra.mxu1 %v1912_v17 }
 0x125   :  { %644 = vmatprep.subr.mxu0 %v1916_v18  ;;  %715 = vmatprep.subr.mxu1 %v1918_v19 }
 0x126   :  { %645 = vmatpush1.msra.mxu0 %v1922_v20  ;;  %716 = vmatpush1.msra.mxu1 %v1924_v21 }
 0x127   :  { %646 = vmatprep.subr.mxu0 %v1928_v22  ;;  %717 = vmatprep.subr.mxu1 %v1930_v23 }
 0x128   :  { %647 = vmatpush1.msra.mxu0 %v1934_v24  ;;  %718 = vmatpush1.msra.mxu1 %v1936_v25 }
 0x129   :  { %648 = vmatprep.subr.mxu0 %v1940_v26  ;;  %719 = vmatprep.subr.mxu1 %v1942_v27 }
 0x12a   :  { %649 = vmatpush1.msra.mxu0 %v1946_v28  ;;  %720 = vmatpush1.msra.mxu1 %v1948_v29 }
 0x12b   :  { %650 = vmatprep.subr.mxu0 %v1952_v30  ;;  %721 = vmatprep.subr.mxu1 %v1954_v31 }
 0x12c   :  { %651 = vmatpush1.msra.mxu0 %v1958_v32  ;;  %722 = vmatpush1.msra.mxu1 %v1960_v33 }
 0x12d   :  { %652 = vmatprep.subr.mxu0 %v1964_v34  ;;  %723 = vmatprep.subr.mxu1 %v1966_v35 }
 0x12e   :  { %653 = vmatpush1.msra.mxu0 %v1970_v36  ;;  %724 = vmatpush1.msra.mxu1 %v1972_v37 }
 0x12f   :  { %654 = vmatprep.subr.mxu0 %v1976_v38  ;;  %725 = vmatprep.subr.mxu1 %v1978_v39 }
 0x130   :  { %655 = vmatpush1.msra.mxu0 %v1982_v40  ;;  %726 = vmatpush1.msra.mxu1 %v1984_v41 }
 0x131   :  { %656 = vmatprep.subr.mxu0 %v1988_v42  ;;  %727 = vmatprep.subr.mxu1 %v1990_v43 }
 0x132   :  { %657 = vmatpush1.msra.mxu0 %v2987_v46  ;;  %728 = vmatpush1.msra.mxu1 %v2988_v52 }
 0x133   :  { %658 = vmatprep.subr.mxu0 %v2000_v47  ;;  %729 = vmatprep.subr.mxu1 %v2002_v48  ;;  %v3016_v47 = vld [vmem:[#allocation39_spill] sm:$0xff] }
 0x134   :  { %659 = vmatpush1.msra.mxu0 %v2989_v60  ;;  %730 = vmatpush1.msra.mxu1 %v2990_v0 }
 0x135   :  { %660 = vmatprep.subr.mxu0 %v2991_v1  ;;  %731 = vmatprep.subr.mxu1 %v2992_v59  ;;  %v3014_v1 = vld [vmem:[#allocation36_spill] sm:$0xff] }
 0x136   :  { %661 = vmatpush1.msra.mxu0 %v2993_v45  ;;  %732 = vmatpush1.msra.mxu1 %v2994_v62  ;;  %v3005_v62 = vld [vmem:[#allocation31_spill] sm:$0xff] }
 0x137   :  { %662 = vmatprep.subr.mxu0 %v2995_v58  ;;  %733 = vmatprep.subr.mxu1 %v2996_v53  ;;  %v3006_v58 = vmov 0.0   ;;  %v3007_v53 = vld [vmem:[#allocation32_spill] sm:$0xff] }
 0x138   :  { %663 = vmatpush1.msra.mxu0 %v2997_v51  ;;  %734 = vmatpush1.msra.mxu1 %v2998_v54  ;;  %v3008_v54 = vld [vmem:[#allocation7_spill] sm:$0xff] }
 0x139   :  { %664 = vmatprep.subr.mxu0 %v2999_v56  ;;  %735 = vmatprep.subr.mxu1 %v3000_v2  ;;  %v3009_v56 = vld [vmem:[#allocation8_spill] sm:$0xff] }
 0x13a   :  { %665 = vmatpush1.msra.mxu0 %v3001_v3  ;;  %736 = vmatpush1.msra.mxu1 %v3002_v57  ;;  %v3010_v3 = vld [vmem:[#allocation28_spill] sm:$0xff]  ;;  %v53_v57 = vpop.permute.xlu0 %52 }
 0x13b   :  { %666 = vmatprep.subr.mxu0 %v3003_v63  ;;  %737 = vmatprep.subr.mxu1 %v3004_v49  ;;  %v57_v2 = vrot.slane %v3010_v3, %v2178_v55  ;;  %v3011_v63 = vld [vmem:[#allocation34_spill] sm:$0xff]  ;;  %v3012_v49 = vld [vmem:[#allocation35_spill] sm:$0xff]  ;;  %v125_v0 = vmul.f32 %v3014_v1, %v53_v57 }
 0x13c   :  { %667 = vmatpush1.msra.mxu0 %v3005_v62  ;;  %700 = vmatprep.mubr.f32.mxu0 %v3006_v58  ;;  %v122_v51 = vmul.f32 %v3011_v63, %v53_v57  ;;  %v123_v45 = vmul.f32 %v3012_v49, %v53_v57  ;;  %v3013_v62 = vld [vmem:[#allocation37_spill] sm:$0xff]  ;;  %v124_v63 = vmul.f32 %v2183_v61, %v53_v57 }
 0x13d   :  { %738 = vmatpush1.msra.mxu1 %v3007_v53  ;;  %771 = vmatprep.mubr.f32.mxu1 %v3006_v58  ;;  %v3015_v53 = vld [vmem:[#allocation38_spill] sm:$0xff] }
 0x13e   :  { %802 = vmatprep.subr.mxu0 %v3008_v54  ;;  %873 = vmatprep.subr.mxu1 %v3009_v56  ;;  %v176_v59 = vadd.f32 %v3013_v62, %v122_v51  ;;  %v177_v60 = vadd.f32 %v3015_v53, %v123_v45  ;;  %v179_v56 = vadd.f32 %v3016_v47, %v125_v0 }
 0x13f   :  { %59 = vbcast.lane.b32.xlu1 %v57_v2, 256  ;;  %v178_v51 = vadd.f32 %v2186_v44, %v124_v63  ;;  %v3022_v63 = vld [vmem:[#allocation14_spill] sm:$0xff] }
 0x1dd   :  { %v536_v58 = vpop.f32.mrf.mxu0  ;;  %v607_v48 = vpop.f32.mrf.mxu1 }
 0x1de   :  { %v612_v54 = vadd.f32 %v536_v58, %v176_v59  ;;  %v614_v62 = vadd.f32 %v607_v48, %v178_v51  ;;  %v3026_v51 = vld [vmem:[#allocation19_spill] sm:$0xff] }
 0x1df   :  { %v538_v52 = vpop.f32.mrf.mxu0  ;;  %v609_v46 = vpop.f32.mrf.mxu1 }
 0x1e0   :  { %1668 = vtanh.f32 %v612_v54  ;;  %v613_v55 = vadd.f32 %v538_v52, %v177_v60  ;;  %v615_v2 = vadd.f32 %v609_v46, %v179_v56 }
 0x1e2   :  { %1670 = vtanh.f32 %v613_v55  ;;  %v3024_v55 = vld [vmem:[#allocation16_spill] sm:$0xff] }
 0x1e3   :  { %1672 = vtanh.f32 %v615_v2  ;;  %v3025_v2 = vld [vmem:[#allocation18_spill] sm:$0xff] }
 0x1e4   :  { %1674 = vtanh.f32 %v614_v62  ;;  %v3020_v62 = vld [vmem:[#allocation12_spill] sm:$0xff] }
 0x1ed   :  { %v1669_v1 = vpop.eup %1668 }
 0x1ee   :  { %v620_v49 = vmul.f32 0.5, %v1669_v1  ;;  %v3019_v1 = vld [vmem:[#allocation11_spill] sm:$0xff] }
 0x1ef   :  { %v1671_v45 = vpop.eup %1670 }
 0x1f0   :  { %v623_v53 = vadd.f32 0.5, %v620_v49  ;;  %v621_v59 = vmul.f32 0.5, %v1671_v45  ;;  %v1673_v0 = vpop.eup %1672  ;;  %v3023_v49 = vld [vmem:[#allocation15_spill] sm:$0xff]  ;;  %v3027_v45 = vld [vmem:[#allocation20_spill] sm:$0xff] }
 0x1f1   :  { %v1675_v46 = vpop.eup %1674 }
 0x1f2   :  { %v624_v58 = vadd.f32 0.5, %v621_v59  ;;  %v627_v54 = vmul.f32 %v1673_v0, %v623_v53  ;;  %v622_v60 = vmul.f32 0.5, %v1675_v46  ;;  %v3021_v53 = vld [vmem:[#allocation13_spill] sm:$0xff]  ;;  %v3030_v0 = vld [vmem:[#allocation23_spill] sm:$0xff] }
 0x1f3   :  { %v3028_v59 = vld [vmem:[#allocation21_spill] sm:$0xff] }
 0x1f4   :  { %v626_v47 = vmul.f32 %v624_v58, %v2190_v50  ;;  %v625_v56 = vadd.f32 0.5, %v622_v60  ;;  %v3018_v50 = vld [vmem:[#allocation10_spill] sm:$0xff]  ;;  %v3032_v46 = vld [vmem:[#allocation25_spill] sm:$0xff] }
 0x1f5   :  { %v3029_v58 = vld [vmem:[#allocation22_spill] sm:$0xff] }
 0x1f6   :  { %v2270_v52 = vadd.f32 %v627_v54, %v626_v47  ;;  %v3017_v47 = vld [vmem:[#allocation9_spill] sm:$0xff]  ;;  %v3031_v54 = vld [vmem:[#allocation24_spill] sm:$0xff]  ;;  %v3033_v60 = vld [vmem:[#allocation26_spill] sm:$0xff] }
 0x1f8   :  { %1676 = vtanh.f32 %v2270_v52 }
 0x205   :  { %v1677_v57 = vpop.eup %1676 }
 0x206   :  { %v630_v48 = vmul.f32 %v1677_v57, %v625_v56  ;;  %v3034_v56 = vld [vmem:[#allocation27_spill] sm:$0xff]  ;;  %v3035_v57 = vld [vmem:[#allocation29_spill] sm:$0xff] }
 0x208   :  { %701 = vmatmul.mubr.f32.vlgmr.msra.gmra.mxu0 %v630_v48  ;;  %772 = vmatmul.mubr.f32.vlgmr.msra.gmra.mxu1 %v630_v48  ;;  %v3036_v48 = vld [vmem:[#allocation30_spill] sm:$0xff] }
 0x209   :  { %803 = vmatpush1.msra.mxu0 %v1876_v4  ;;  %874 = vmatpush1.msra.mxu1 %v1880_v5 }
 0x20a   :  { %804 = vmatprep.subr.mxu0 %v1882_v6  ;;  %875 = vmatprep.subr.mxu1 %v1884_v7 }
 0x20b   :  { %805 = vmatpush1.msra.mxu0 %v1888_v8  ;;  %876 = vmatpush1.msra.mxu1 %v1890_v9 }
 0x20c   :  { %806 = vmatprep.subr.mxu0 %v1892_v10  ;;  %877 = vmatprep.subr.mxu1 %v1896_v11 }
 0x20d   :  { %807 = vmatpush1.msra.mxu0 %v1898_v12  ;;  %878 = vmatpush1.msra.mxu1 %v1900_v13 }
 0x20e   :  { %808 = vmatprep.subr.mxu0 %v1904_v14  ;;  %879 = vmatprep.subr.mxu1 %v1906_v15 }
 0x20f   :  { %809 = vmatpush1.msra.mxu0 %v1910_v16  ;;  %880 = vmatpush1.msra.mxu1 %v1912_v17 }
 0x210   :  { %810 = vmatprep.subr.mxu0 %v1916_v18  ;;  %881 = vmatprep.subr.mxu1 %v1918_v19 }
 0x211   :  { %811 = vmatpush1.msra.mxu0 %v1922_v20  ;;  %882 = vmatpush1.msra.mxu1 %v1924_v21 }
 0x212   :  { %812 = vmatprep.subr.mxu0 %v1928_v22  ;;  %883 = vmatprep.subr.mxu1 %v1930_v23 }
 0x213   :  { %813 = vmatpush1.msra.mxu0 %v1934_v24  ;;  %884 = vmatpush1.msra.mxu1 %v1936_v25 }
 0x214   :  { %814 = vmatprep.subr.mxu0 %v1940_v26  ;;  %885 = vmatprep.subr.mxu1 %v1942_v27 }
 0x215   :  { %815 = vmatpush1.msra.mxu0 %v1946_v28  ;;  %886 = vmatpush1.msra.mxu1 %v1948_v29 }
 0x216   :  { %816 = vmatprep.subr.mxu0 %v1952_v30  ;;  %887 = vmatprep.subr.mxu1 %v1954_v31 }
 0x217   :  { %817 = vmatpush1.msra.mxu0 %v1958_v32  ;;  %888 = vmatpush1.msra.mxu1 %v1960_v33 }
 0x218   :  { %818 = vmatprep.subr.mxu0 %v1964_v34  ;;  %889 = vmatprep.subr.mxu1 %v1966_v35 }
 0x219   :  { %819 = vmatpush1.msra.mxu0 %v1970_v36  ;;  %890 = vmatpush1.msra.mxu1 %v1972_v37 }
 0x21a   :  { %820 = vmatprep.subr.mxu0 %v1976_v38  ;;  %891 = vmatprep.subr.mxu1 %v1978_v39 }
 0x21b   :  { %821 = vmatpush1.msra.mxu0 %v1982_v40  ;;  %892 = vmatpush1.msra.mxu1 %v1984_v41 }
 0x21c   :  { %822 = vmatprep.subr.mxu0 %v1988_v42  ;;  %893 = vmatprep.subr.mxu1 %v1990_v43 }
 0x21d   :  { %823 = vmatpush1.msra.mxu0 %v3017_v47  ;;  %894 = vmatpush1.msra.mxu1 %v3018_v50 }
 0x21e   :  { %824 = vmatprep.subr.mxu0 %v3019_v1  ;;  %895 = vmatprep.subr.mxu1 %v3020_v62  ;;  %v3048_v1 = vld [vmem:[#allocation39_spill] sm:$0xff] }
 0x21f   :  { %825 = vmatpush1.msra.mxu0 %v3021_v53  ;;  %896 = vmatpush1.msra.mxu1 %v3022_v63 }
 0x220   :  { %826 = vmatprep.subr.mxu0 %v3023_v49  ;;  %897 = vmatprep.subr.mxu1 %v3024_v55  ;;  %v3046_v49 = vld [vmem:[#allocation36_spill] sm:$0xff] }
 0x221   :  { %827 = vmatpush1.msra.mxu0 %v3025_v2  ;;  %898 = vmatpush1.msra.mxu1 %v3026_v51  ;;  %v3037_v51 = vld [vmem:[#allocation31_spill] sm:$0xff] }
 0x222   :  { %828 = vmatprep.subr.mxu0 %v3027_v45  ;;  %899 = vmatprep.subr.mxu1 %v3028_v59  ;;  %v3038_v45 = vmov 0.0   ;;  %v3039_v59 = vld [vmem:[#allocation32_spill] sm:$0xff] }
 0x223   :  { %829 = vmatpush1.msra.mxu0 %v3029_v58  ;;  %900 = vmatpush1.msra.mxu1 %v3030_v0  ;;  %v3040_v0 = vld [vmem:[#allocation7_spill] sm:$0xff] }
 0x224   :  { %830 = vmatprep.subr.mxu0 %v3031_v54  ;;  %901 = vmatprep.subr.mxu1 %v3032_v46  ;;  %v3041_v54 = vld [vmem:[#allocation8_spill] sm:$0xff]  ;;  %v3042_v46 = vld [vmem:[#allocation33_spill] sm:$0xff] }
 0x225   :  { %831 = vmatpush1.msra.mxu0 %v3033_v60  ;;  %902 = vmatpush1.msra.mxu1 %v3034_v56  ;;  %v64_v60 = vrot.slane %v3010_v3, %v3042_v46  ;;  %v60_v56 = vpop.permute.xlu1 %59 }
 0x226   :  { %832 = vmatprep.subr.mxu0 %v3035_v57  ;;  %903 = vmatprep.subr.mxu1 %v3036_v48  ;;  %v3043_v57 = vld [vmem:[#allocation34_spill] sm:$0xff]  ;;  %v3044_v48 = vld [vmem:[#allocation35_spill] sm:$0xff]  ;;  %v129_v63 = vmul.f32 %v3046_v49, %v60_v56 }
 0x227   :  { %833 = vmatpush1.msra.mxu0 %v3037_v51  ;;  %866 = vmatprep.mubr.f32.mxu0 %v3038_v45  ;;  %v126_v58 = vmul.f32 %v3043_v57, %v60_v56  ;;  %v127_v2 = vmul.f32 %v3044_v48, %v60_v56  ;;  %v3045_v51 = vld [vmem:[#allocation37_spill] sm:$0xff]  ;;  %v128_v57 = vmul.f32 %v2183_v61, %v60_v56 }
 0x228   :  { %904 = vmatpush1.msra.mxu1 %v3039_v59  ;;  %937 = vmatprep.mubr.f32.mxu1 %v3038_v45  ;;  %v3047_v59 = vld [vmem:[#allocation38_spill] sm:$0xff] }
 0x229   :  { %968 = vmatprep.subr.mxu0 %v3040_v0  ;;  %1039 = vmatprep.subr.mxu1 %v3041_v54  ;;  %v180_v55 = vadd.f32 %v3045_v51, %v126_v58  ;;  %v181_v53 = vadd.f32 %v3047_v59, %v127_v2  ;;  %v183_v54 = vadd.f32 %v3048_v1, %v129_v63 }
 0x22a   :  { %66 = vbcast.lane.b32.xlu1 %v64_v60, 256  ;;  %v182_v58 = vadd.f32 %v2186_v44, %v128_v57 }
 0x2c8   :  { %v702_v45 = vpop.f32.mrf.mxu0  ;;  %v773_v62 = vpop.f32.mrf.mxu1 }
 0x2c9   :  { %v778_v0 = vadd.f32 %v702_v45, %v180_v55  ;;  %v780_v51 = vadd.f32 %v773_v62, %v182_v58 }
 0x2ca   :  { %v704_v50 = vpop.f32.mrf.mxu0  ;;  %v775_v47 = vpop.f32.mrf.mxu1 }
 0x2cb   :  { %1678 = vtanh.f32 %v778_v0  ;;  %v779_v46 = vadd.f32 %v704_v50, %v181_v53  ;;  %v781_v60 = vadd.f32 %v775_v47, %v183_v54 }
 0x2cd   :  { %1680 = vtanh.f32 %v779_v46 }
 0x2ce   :  { %1682 = vtanh.f32 %v781_v60 }
 0x2cf   :  { %1684 = vtanh.f32 %v780_v51 }
 0x2d8   :  { %v1679_v49 = vpop.eup %1678 }
 0x2d9   :  { %v786_v48 = vmul.f32 0.5, %v1679_v49  ;;  %v3080_v49 = vld [vmem:[#allocation39_spill] sm:$0xff] }
 0x2da   :  { %v1681_v2 = vpop.eup %1680 }
 0x2db   :  { %v789_v59 = vadd.f32 0.5, %v786_v48  ;;  %v787_v55 = vmul.f32 0.5, %v1681_v2  ;;  %v1683_v63 = vpop.eup %1682 }
 0x2dc   :  { %v1685_v47 = vpop.eup %1684 }
 0x2dd   :  { %v790_v45 = vadd.f32 0.5, %v787_v55  ;;  %v793_v0 = vmul.f32 %v1683_v63, %v789_v59  ;;  %v788_v53 = vmul.f32 0.5, %v1685_v47 }
 0x2df   :  { %v792_v1 = vmul.f32 %v790_v45, %v2270_v52  ;;  %v791_v56 = vadd.f32 0.5, %v788_v53 }
 0x2e1   :  { %v2350_v50 = vadd.f32 %v793_v0, %v792_v1 }
 0x2e3   :  { %1686 = vtanh.f32 %v2350_v50 }
 0x2f0   :  { %v1687_v57 = vpop.eup %1686 }
 0x2f1   :  { %v796_v62 = vmul.f32 %v1687_v57, %v791_v56 }
 0x2f3   :  { %867 = vmatmul.mubr.f32.vlgmr.msra.gmra.mxu0 %v796_v62  ;;  %938 = vmatmul.mubr.f32.vlgmr.msra.gmra.mxu1 %v796_v62 }
 0x2f4   :  { %969 = vmatpush1.msra.mxu0 %v1876_v4  ;;  %1040 = vmatpush1.msra.mxu1 %v1880_v5  ;;  %v3049_v4 = vld [vmem:[#allocation9_spill] sm:$0xff]  ;;  %v3050_v5 = vld [vmem:[#allocation10_spill] sm:$0xff] }
 0x2f5   :  { %970 = vmatprep.subr.mxu0 %v1882_v6  ;;  %1041 = vmatprep.subr.mxu1 %v1884_v7  ;;  %v3051_v6 = vld [vmem:[#allocation11_spill] sm:$0xff]  ;;  %v3052_v7 = vld [vmem:[#allocation12_spill] sm:$0xff] }
 0x2f6   :  { %971 = vmatpush1.msra.mxu0 %v1888_v8  ;;  %1042 = vmatpush1.msra.mxu1 %v1890_v9  ;;  %v3053_v8 = vld [vmem:[#allocation13_spill] sm:$0xff]  ;;  %v3054_v9 = vld [vmem:[#allocation14_spill] sm:$0xff] }
 0x2f7   :  { %972 = vmatprep.subr.mxu0 %v1892_v10  ;;  %1043 = vmatprep.subr.mxu1 %v1896_v11  ;;  %v3055_v10 = vld [vmem:[#allocation15_spill] sm:$0xff]  ;;  %v3056_v11 = vld [vmem:[#allocation16_spill] sm:$0xff] }
 0x2f8   :  { %973 = vmatpush1.msra.mxu0 %v1898_v12  ;;  %1044 = vmatpush1.msra.mxu1 %v1900_v13  ;;  %v3057_v12 = vld [vmem:[#allocation18_spill] sm:$0xff]  ;;  %v3058_v13 = vld [vmem:[#allocation19_spill] sm:$0xff] }
 0x2f9   :  { %974 = vmatprep.subr.mxu0 %v1904_v14  ;;  %1045 = vmatprep.subr.mxu1 %v1906_v15  ;;  %v3059_v14 = vld [vmem:[#allocation20_spill] sm:$0xff]  ;;  %v3060_v15 = vld [vmem:[#allocation21_spill] sm:$0xff] }
 0x2fa   :  { %975 = vmatpush1.msra.mxu0 %v1910_v16  ;;  %1046 = vmatpush1.msra.mxu1 %v1912_v17  ;;  %v3061_v16 = vld [vmem:[#allocation22_spill] sm:$0xff]  ;;  %v3062_v17 = vld [vmem:[#allocation23_spill] sm:$0xff] }
 0x2fb   :  { %976 = vmatprep.subr.mxu0 %v1916_v18  ;;  %1047 = vmatprep.subr.mxu1 %v1918_v19  ;;  %v3063_v18 = vld [vmem:[#allocation24_spill] sm:$0xff]  ;;  %v3064_v19 = vld [vmem:[#allocation25_spill] sm:$0xff] }
 0x2fc   :  { %977 = vmatpush1.msra.mxu0 %v1922_v20  ;;  %1048 = vmatpush1.msra.mxu1 %v1924_v21  ;;  %v3065_v20 = vld [vmem:[#allocation26_spill] sm:$0xff]  ;;  %v3066_v21 = vld [vmem:[#allocation27_spill] sm:$0xff] }
 0x2fd   :  { %978 = vmatprep.subr.mxu0 %v1928_v22  ;;  %1049 = vmatprep.subr.mxu1 %v1930_v23  ;;  %v3067_v22 = vld [vmem:[#allocation29_spill] sm:$0xff]  ;;  %v3068_v23 = vld [vmem:[#allocation30_spill] sm:$0xff] }
 0x2fe   :  { %979 = vmatpush1.msra.mxu0 %v1934_v24  ;;  %1050 = vmatpush1.msra.mxu1 %v1936_v25  ;;  %v3069_v24 = vld [vmem:[#allocation31_spill] sm:$0xff]  ;;  %v3070_v25 = vmov 0.0  }
 0x2ff   :  { %980 = vmatprep.subr.mxu0 %v1940_v26  ;;  %1051 = vmatprep.subr.mxu1 %v1942_v27  ;;  %v3071_v26 = vld [vmem:[#allocation32_spill] sm:$0xff] }
 0x300   :  { %981 = vmatpush1.msra.mxu0 %v1946_v28  ;;  %1052 = vmatpush1.msra.mxu1 %v1948_v29  ;;  %v2417_v27 = vld [vmem:[#allocation4 + $0x1e8] sm:$0xff]  ;;  %v2420_v28 = vld [vmem:[#allocation4 + $0x1f8] sm:$0xff]  ;;  %v3074_v29 = vld [vmem:[#allocation17_spill] sm:$0xff] }
 0x301   :  { %982 = vmatprep.subr.mxu0 %v1952_v30  ;;  %1053 = vmatprep.subr.mxu1 %v1954_v31  ;;  %3072 = vst [vmem:[#allocation28_spill] sm:$0xff] %v2417_v27  ;;  %3073 = vst [vmem:[#allocation7_spill] sm:$0xff] %v2420_v28  ;;  %v70_v30 = vsub.s32 4, %v3074_v29 }
 0x302   :  { %983 = vmatpush1.msra.mxu0 %v1958_v32  ;;  %1054 = vmatpush1.msra.mxu1 %v1960_v33  ;;  %v67_v32 = vpop.permute.xlu1 %66  ;;  %v3075_v33 = vld [vmem:[#allocation34_spill] sm:$0xff] }
 0x303   :  { %984 = vmatprep.subr.mxu0 %v1964_v34  ;;  %1055 = vmatprep.subr.mxu1 %v1966_v35  ;;  %v71_v31 = vrot.slane %v3010_v3, %v70_v30  ;;  %v130_v34 = vmul.f32 %v3075_v33, %v67_v32  ;;  %v3076_v35 = vld [vmem:[#allocation35_spill] sm:$0xff]  ;;  %v132_v46 = vmul.f32 %v2183_v61, %v67_v32  ;;  %v2491_v30 = vld [vmem:[#allocation4 + $0x148] sm:$0xff] }
 0x304   :  { %985 = vmatpush1.msra.mxu0 %v1970_v36  ;;  %1056 = vmatpush1.msra.mxu1 %v1972_v37  ;;  %v131_v36 = vmul.f32 %v3076_v35, %v67_v32  ;;  %v3077_v37 = vld [vmem:[#allocation37_spill] sm:$0xff] }
 0x305   :  { %986 = vmatprep.subr.mxu0 %v1976_v38  ;;  %1057 = vmatprep.subr.mxu1 %v1978_v39  ;;  %v184_v38 = vadd.f32 %v3077_v37, %v130_v34  ;;  %v3078_v39 = vld [vmem:[#allocation36_spill] sm:$0xff]  ;;  %v186_v60 = vadd.f32 %v2186_v44, %v132_v46  ;;  %v2500_v34 = vld [vmem:[#allocation4 + $0x150] sm:$0xff] }
 0x306   :  { %987 = vmatpush1.msra.mxu0 %v1982_v40  ;;  %1058 = vmatpush1.msra.mxu1 %v1984_v41  ;;  %v133_v40 = vmul.f32 %v3078_v39, %v67_v32  ;;  %v3079_v41 = vld [vmem:[#allocation38_spill] sm:$0xff]  ;;  %v2497_v32 = vld [vmem:[#allocation4 + $0x140] sm:$0xff]  ;;  %v2539_v46 = vld [vmem:[#allocation4 + $0xc8] sm:$0xff] }
 0x307   :  { %988 = vmatprep.subr.mxu0 %v1988_v42  ;;  %1059 = vmatprep.subr.mxu1 %v1990_v43  ;;  %v185_v42 = vadd.f32 %v3079_v41, %v131_v36  ;;  %v2503_v36 = vld [vmem:[#allocation4 + $0x128] sm:$0xff] }
 0x308   :  { %989 = vmatpush1.msra.mxu0 %v3049_v4  ;;  %1060 = vmatpush1.msra.mxu1 %v3050_v5  ;;  %v187_v51 = vadd.f32 %v3080_v49, %v133_v40  ;;  %v2509_v40 = vld [vmem:[#allocation4 + $0x120] sm:$0xff] }
 0x309   :  { %990 = vmatprep.subr.mxu0 %v3051_v6  ;;  %1061 = vmatprep.subr.mxu1 %v3052_v7 }
 0x30a   :  { %991 = vmatpush1.msra.mxu0 %v3053_v8  ;;  %1062 = vmatpush1.msra.mxu1 %v3054_v9  ;;  %v2437_v9 = vld [vmem:[#allocation4 + $0x1e0] sm:$0xff] }
 0x30b   :  { %992 = vmatprep.subr.mxu0 %v3055_v10  ;;  %1063 = vmatprep.subr.mxu1 %v3056_v11  ;;  %v2440_v10 = vld [vmem:[#allocation4 + $0x1f0] sm:$0xff]  ;;  %v2446_v11 = vld [vmem:[#allocation4 + $0x1d8] sm:$0xff] }
 0x30c   :  { %993 = vmatpush1.msra.mxu0 %v3057_v12  ;;  %1064 = vmatpush1.msra.mxu1 %v3058_v13  ;;  %v2449_v12 = vld [vmem:[#allocation4 + $0x1c0] sm:$0xff]  ;;  %v2452_v13 = vld [vmem:[#allocation4 + $0x1d0] sm:$0xff] }
 0x30d   :  { %994 = vmatprep.subr.mxu0 %v3059_v14  ;;  %1065 = vmatprep.subr.mxu1 %v3060_v15  ;;  %v2455_v14 = vld [vmem:[#allocation4 + $0x1a8] sm:$0xff]  ;;  %v2458_v15 = vld [vmem:[#allocation4 + $0x1b8] sm:$0xff] }
 0x30e   :  { %995 = vmatpush1.msra.mxu0 %v3061_v16  ;;  %1066 = vmatpush1.msra.mxu1 %v3062_v17  ;;  %v2461_v16 = vld [vmem:[#allocation4 + $0x1a0] sm:$0xff]  ;;  %v2464_v17 = vld [vmem:[#allocation4 + $0x1b0] sm:$0xff] }
 0x30f   :  { %996 = vmatprep.subr.mxu0 %v3063_v18  ;;  %1067 = vmatprep.subr.mxu1 %v3064_v19  ;;  %v2467_v18 = vld [vmem:[#allocation4 + $0x188] sm:$0xff]  ;;  %v2470_v19 = vld [vmem:[#allocation4 + $0x198] sm:$0xff] }
 0x310   :  { %997 = vmatpush1.msra.mxu0 %v3065_v20  ;;  %1068 = vmatpush1.msra.mxu1 %v3066_v21  ;;  %v2473_v20 = vld [vmem:[#allocation4 + $0x180] sm:$0xff]  ;;  %v2476_v21 = vld [vmem:[#allocation4 + $0x190] sm:$0xff] }
 0x311   :  { %998 = vmatprep.subr.mxu0 %v3067_v22  ;;  %1069 = vmatprep.subr.mxu1 %v3068_v23  ;;  %v2479_v22 = vld [vmem:[#allocation4 + $0x168] sm:$0xff]  ;;  %v2482_v23 = vld [vmem:[#allocation4 + $0x178] sm:$0xff] }
 0x312   :  { %999 = vmatpush1.msra.mxu0 %v3069_v24  ;;  %1032 = vmatprep.mubr.f32.mxu0 %v3070_v25  ;;  %v2485_v24 = vld [vmem:[#allocation4 + $0x160] sm:$0xff] }
 0x313   :  { %1070 = vmatpush1.msra.mxu1 %v3071_v26  ;;  %1103 = vmatprep.mubr.f32.mxu1 %v3070_v25  ;;  %v2488_v26 = vld [vmem:[#allocation4 + $0x170] sm:$0xff] }
 0x314   :  { %1134 = vmatprep.subr.mxu0 %v2417_v27  ;;  %1205 = vmatprep.subr.mxu1 %v2420_v28 }
 0x315   :  { %73 = vbcast.lane.b32.xlu0 %v71_v31, 256  ;;  %v2494_v31 = vld [vmem:[#allocation4 + $0x158] sm:$0xff] }
 0x3b3   :  { %v868_v43 = vpop.f32.mrf.mxu0  ;;  %v939_v52 = vpop.f32.mrf.mxu1 }
 0x3b4   :  { %v944_v1 = vadd.f32 %v868_v43, %v184_v38  ;;  %v946_v58 = vadd.f32 %v939_v52, %v186_v60  ;;  %v2506_v38 = vld [vmem:[#allocation4 + $0x138] sm:$0xff]  ;;  %v2515_v43 = vld [vmem:[#allocation4 + $0x108] sm:$0xff] }
 0x3b5   :  { %v870_v59 = vpop.f32.mrf.mxu0  ;;  %v941_v48 = vpop.f32.mrf.mxu1  ;;  %v2518_v52 = vld [vmem:[#allocation4 + $0x118] sm:$0xff] }
 0x3b6   :  { %1688 = vtanh.f32 %v944_v1  ;;  %v945_v3 = vadd.f32 %v870_v59, %v185_v42  ;;  %v947_v54 = vadd.f32 %v941_v48, %v187_v51  ;;  %v2512_v42 = vld [vmem:[#allocation4 + $0x130] sm:$0xff]  ;;  %v2521_v1 = vld [vmem:[#allocation4 + $0x100] sm:$0xff]  ;;  %v2527_v59 = vld [vmem:[#allocation4 + $0xe8] sm:$0xff] }
 0x3b7   :  { %v2524_v51 = vld [vmem:[#allocation4 + $0x110] sm:$0xff]  ;;  %v2530_v48 = vld [vmem:[#allocation4 + $0xf8] sm:$0xff] }
 0x3b8   :  { %1690 = vtanh.f32 %v945_v3  ;;  %v2533_v3 = vld [vmem:[#allocation4 + $0xe0] sm:$0xff]  ;;  %v2542_v60 = vld [vmem:[#allocation4 + $0xd8] sm:$0xff] }
 0x3b9   :  { %1692 = vtanh.f32 %v947_v54  ;;  %v2536_v54 = vld [vmem:[#allocation4 + $0xf0] sm:$0xff] }
 0x3ba   :  { %1694 = vtanh.f32 %v946_v58  ;;  %v2545_v58 = vld [vmem:[#allocation4 + $0xc0] sm:$0xff] }
 0x3c3   :  { %v1689_v2 = vpop.eup %1688 }
 0x3c4   :  { %v952_v55 = vmul.f32 0.5, %v1689_v2  ;;  %v2548_v2 = vld [vmem:[#allocation4 + $0xd0] sm:$0xff] }
 0x3c5   :  { %v1691_v45 = vpop.eup %1690 }
 0x3c6   :  { %v955_v63 = vadd.f32 0.5, %v952_v55  ;;  %v953_v0 = vmul.f32 0.5, %v1691_v45  ;;  %v1693_v53 = vpop.eup %1692  ;;  %v2551_v55 = vld [vmem:[#allocation4 + $0xa8] sm:$0xff]  ;;  %v2554_v45 = vld [vmem:[#allocation4 + $0xb8] sm:$0xff] }
 0x3c7   :  { %v1695_v4 = vpop.eup %1694 }
 0x3c8   :  { %v956_v47 = vadd.f32 0.5, %v953_v0  ;;  %v959_v57 = vmul.f32 %v1693_v53, %v955_v63  ;;  %v954_v5 = vmul.f32 0.5, %v1695_v4  ;;  %v2557_v63 = vld [vmem:[#allocation4 + $0xa0] sm:$0xff]  ;;  %v2560_v0 = vld [vmem:[#allocation4 + $0xb0] sm:$0xff]  ;;  %v2566_v53 = vld [vmem:[#allocation4 + $0x98] sm:$0xff] }
 0x3c9   :  { %3081 = vst [vmem:[#allocation8_spill] sm:$0xff] %v2557_v63  ;;  %3082 = vst [vmem:[#allocation33_spill] sm:$0xff] %v2560_v0  ;;  %v2575_v4 = vld [vmem:[#allocation4 + $0x68] sm:$0xff] }
 0x3ca   :  { %v958_v56 = vmul.f32 %v956_v47, %v2350_v50  ;;  %v957_v6 = vadd.f32 0.5, %v954_v5  ;;  %v2443_v50 = vld [vmem:[#allocation4 + $0x1c8] sm:$0xff]  ;;  %3084 = vst [vmem:[#allocation10_spill] sm:$0xff] %v2566_v53  ;;  %3087 = vst [vmem:[#allocation13_spill] sm:$0xff] %v2575_v4  ;;  %v2578_v5 = vld [vmem:[#allocation4 + $0x78] sm:$0xff] }
 0x3cb   :  { %v2563_v47 = vld [vmem:[#allocation4 + $0x88] sm:$0xff]  ;;  %3088 = vst [vmem:[#allocation14_spill] sm:$0xff] %v2578_v5 }
 0x3cc   :  { %v2434_v62 = vadd.f32 %v959_v57, %v958_v56  ;;  %3083 = vst [vmem:[#allocation9_spill] sm:$0xff] %v2563_v47  ;;  %v2569_v56 = vld [vmem:[#allocation4 + $0x80] sm:$0xff]  ;;  %v2572_v57 = vld [vmem:[#allocation4 + $0x90] sm:$0xff] }
 0x3cd   :  { %3085 = vst [vmem:[#allocation11_spill] sm:$0xff] %v2569_v56  ;;  %3086 = vst [vmem:[#allocation12_spill] sm:$0xff] %v2572_v57 }
 0x3ce   :  { %1696 = vtanh.f32 %v2434_v62 }
 0x3db   :  { %v1697_v7 = vpop.eup %1696 }
 0x3dc   :  { %v962_v8 = vmul.f32 %v1697_v7, %v957_v6  ;;  %v2581_v6 = vld [vmem:[#allocation4 + $0x60] sm:$0xff]  ;;  %v2584_v7 = vld [vmem:[#allocation4 + $0x70] sm:$0xff] }
 0x3dd   :  { %3089 = vst [vmem:[#allocation15_spill] sm:$0xff] %v2581_v6  ;;  %3090 = vst [vmem:[#allocation16_spill] sm:$0xff] %v2584_v7 }
 0x3de   :  { %1033 = vmatmul.mubr.f32.vlgmr.msra.gmra.mxu0 %v962_v8  ;;  %1104 = vmatmul.mubr.f32.vlgmr.msra.gmra.mxu1 %v962_v8  ;;  %v2587_v8 = vld [vmem:[#allocation4 + $0x48] sm:$0xff] }
 0x3df   :  { %1135 = vmatpush1.msra.mxu0 %v2437_v9  ;;  %1206 = vmatpush1.msra.mxu1 %v2440_v10  ;;  %3091 = vst [vmem:[#allocation18_spill] sm:$0xff] %v2587_v8 }
 0x3e0   :  { %1136 = vmatprep.subr.mxu0 %v2443_v50  ;;  %1207 = vmatprep.subr.mxu1 %v2446_v11 }
 0x3e1   :  { %1137 = vmatpush1.msra.mxu0 %v2449_v12  ;;  %1208 = vmatpush1.msra.mxu1 %v2452_v13 }
 0x3e2   :  { %1138 = vmatprep.subr.mxu0 %v2455_v14  ;;  %1209 = vmatprep.subr.mxu1 %v2458_v15 }
 0x3e3   :  { %1139 = vmatpush1.msra.mxu0 %v2461_v16  ;;  %1210 = vmatpush1.msra.mxu1 %v2464_v17 }
 0x3e4   :  { %1140 = vmatprep.subr.mxu0 %v2467_v18  ;;  %1211 = vmatprep.subr.mxu1 %v2470_v19 }
 0x3e5   :  { %1141 = vmatpush1.msra.mxu0 %v2473_v20  ;;  %1212 = vmatpush1.msra.mxu1 %v2476_v21 }
 0x3e6   :  { %1142 = vmatprep.subr.mxu0 %v2479_v22  ;;  %1213 = vmatprep.subr.mxu1 %v2482_v23 }
 0x3e7   :  { %1143 = vmatpush1.msra.mxu0 %v2485_v24  ;;  %1214 = vmatpush1.msra.mxu1 %v2488_v26 }
 0x3e8   :  { %1144 = vmatprep.subr.mxu0 %v2491_v30  ;;  %1215 = vmatprep.subr.mxu1 %v2494_v31 }
 0x3e9   :  { %1145 = vmatpush1.msra.mxu0 %v2497_v32  ;;  %1216 = vmatpush1.msra.mxu1 %v2500_v34 }
 0x3ea   :  { %1146 = vmatprep.subr.mxu0 %v2503_v36  ;;  %1217 = vmatprep.subr.mxu1 %v2506_v38 }
 0x3eb   :  { %1147 = vmatpush1.msra.mxu0 %v2509_v40  ;;  %1218 = vmatpush1.msra.mxu1 %v2512_v42 }
 0x3ec   :  { %1148 = vmatprep.subr.mxu0 %v2515_v43  ;;  %1219 = vmatprep.subr.mxu1 %v2518_v52 }
 0x3ed   :  { %1149 = vmatpush1.msra.mxu0 %v2521_v1  ;;  %1220 = vmatpush1.msra.mxu1 %v2524_v51 }
 0x3ee   :  { %1150 = vmatprep.subr.mxu0 %v2527_v59  ;;  %1221 = vmatprep.subr.mxu1 %v2530_v48 }
 0x3ef   :  { %1151 = vmatpush1.msra.mxu0 %v2533_v3  ;;  %1222 = vmatpush1.msra.mxu1 %v2536_v54 }
 0x3f0   :  { %1152 = vmatprep.subr.mxu0 %v2539_v46  ;;  %1223 = vmatprep.subr.mxu1 %v2542_v60 }
 0x3f1   :  { %1153 = vmatpush1.msra.mxu0 %v2545_v58  ;;  %1224 = vmatpush1.msra.mxu1 %v2548_v2 }
 0x3f2   :  { %1154 = vmatprep.subr.mxu0 %v2551_v55  ;;  %1225 = vmatprep.subr.mxu1 %v2554_v45 }
 0x3f3   :  { %1155 = vmatpush1.msra.mxu0 %v2557_v63  ;;  %1226 = vmatpush1.msra.mxu1 %v2560_v0 }
 0x3f4   :  { %1156 = vmatprep.subr.mxu0 %v2563_v47  ;;  %1227 = vmatprep.subr.mxu1 %v2566_v53 }
 0x3f5   :  { %1157 = vmatpush1.msra.mxu0 %v2569_v56  ;;  %1228 = vmatpush1.msra.mxu1 %v2572_v57  ;;  %v2590_v57 = vld [vmem:[#allocation4 + $0x58] sm:$0xff] }
 0x3f6   :  { %1158 = vmatprep.subr.mxu0 %v2575_v4  ;;  %1229 = vmatprep.subr.mxu1 %v2578_v5  ;;  %3092 = vst [vmem:[#allocation19_spill] sm:$0xff] %v2590_v57  ;;  %v2593_v4 = vld [vmem:[#allocation4 + $0x40] sm:$0xff]  ;;  %v2596_v5 = vld [vmem:[#allocation4 + $0x50] sm:$0xff] }
 0x3f7   :  { %1159 = vmatpush1.msra.mxu0 %v2581_v6  ;;  %1230 = vmatpush1.msra.mxu1 %v2584_v7  ;;  %3093 = vst [vmem:[#allocation20_spill] sm:$0xff] %v2593_v4  ;;  %3094 = vst [vmem:[#allocation21_spill] sm:$0xff] %v2596_v5  ;;  %v2599_v6 = vld [vmem:[#allocation4 + $0x28] sm:$0xff]  ;;  %v2602_v7 = vld [vmem:[#allocation4 + $0x38] sm:$0xff] }
 0x3f8   :  { %1160 = vmatprep.subr.mxu0 %v2587_v8  ;;  %1231 = vmatprep.subr.mxu1 %v2590_v57  ;;  %3095 = vst [vmem:[#allocation22_spill] sm:$0xff] %v2599_v6  ;;  %3096 = vst [vmem:[#allocation23_spill] sm:$0xff] %v2602_v7  ;;  %v2605_v8 = vld [vmem:[#allocation4 + $0x20] sm:$0xff]  ;;  %v2608_v57 = vld [vmem:[#allocation4 + $0x30] sm:$0xff] }
 0x3f9   :  { %1161 = vmatpush1.msra.mxu0 %v2593_v4  ;;  %1232 = vmatpush1.msra.mxu1 %v2596_v5  ;;  %3097 = vst [vmem:[#allocation24_spill] sm:$0xff] %v2605_v8  ;;  %3098 = vst [vmem:[#allocation25_spill] sm:$0xff] %v2608_v57  ;;  %v2611_v4 = vld [vmem:[#allocation4 + $0x8] sm:$0xff]  ;;  %v2614_v5 = vld [vmem:[#allocation4 + $0x18] sm:$0xff] }
 0x3fa   :  { %1162 = vmatprep.subr.mxu0 %v2599_v6  ;;  %1233 = vmatprep.subr.mxu1 %v2602_v7  ;;  %3099 = vst [vmem:[#allocation26_spill] sm:$0xff] %v2611_v4  ;;  %3100 = vst [vmem:[#allocation27_spill] sm:$0xff] %v2614_v5  ;;  %v2617_v6 = vld [vmem:[#allocation4] sm:$0xff]  ;;  %v2621_v7 = vld [vmem:[#allocation4 + $0x10] sm:$0xff] }
 0x3fb   :  { %1163 = vmatpush1.msra.mxu0 %v2605_v8  ;;  %1234 = vmatpush1.msra.mxu1 %v2608_v57  ;;  %3101 = vst [vmem:[#allocation29_spill] sm:$0xff] %v2617_v6  ;;  %3102 = vst [vmem:[#allocation30_spill] sm:$0xff] %v2621_v7  ;;  %v74_v57 = vpop.permute.xlu0 %73 }
 0x3fc   :  { %1164 = vmatprep.subr.mxu0 %v2611_v4  ;;  %1235 = vmatprep.subr.mxu1 %v2614_v5  ;;  %v77_v4 = vsub.s32 5, %v3074_v29  ;;  %v2631_v5 = vld [vmem:[%s2815_s0] sm:$0xff]  ;;  %v134_v8 = vmul.f32 %v3075_v33, %v74_v57  ;;  %v136_v33 = vmul.f32 %v2183_v61, %v74_v57 }
 0x3fd   :  { %1165 = vmatpush1.msra.mxu0 %v2617_v6  ;;  %1198 = vmatprep.mubr.f32.mxu0 %v3070_v25 }
 0x3fe   :  { %1236 = vmatpush1.msra.mxu1 %v2621_v7  ;;  %1269 = vmatprep.mubr.f32.mxu1 %v3070_v25  ;;  %v78_v6 = vrot.slane %v2631_v5, %v77_v4  ;;  %v135_v7 = vmul.f32 %v3076_v35, %v74_v57  ;;  %v188_v25 = vadd.f32 %v3077_v37, %v134_v8 }
 0x3ff   :  { %1300 = vmatprep.subr.mxu0 %v2417_v27  ;;  %1371 = vmatprep.subr.mxu1 %v2420_v28  ;;  %v137_v27 = vmul.f32 %v3078_v39, %v74_v57  ;;  %v190_v8 = vadd.f32 %v2186_v44, %v136_v33  ;;  %v3109_v57 = vld [vmem:[#allocation13_spill] sm:$0xff] }
 0x400   :  { %80 = vbcast.lane.b32.xlu1 %v78_v6, 256  ;;  %v189_v28 = vadd.f32 %v3079_v41, %v135_v7 }
 0x401   :  { %v191_v47 = vadd.f32 %v3080_v49, %v137_v27 }
 0x49e   :  { %v1034_v29 = vpop.f32.mrf.mxu0  ;;  %v1105_v56 = vpop.f32.mrf.mxu1 }
 0x49f   :  { %v1110_v53 = vadd.f32 %v1034_v29, %v188_v25  ;;  %v1112_v37 = vadd.f32 %v1105_v56, %v190_v8  ;;  %v3112_v8 = vld [vmem:[#allocation16_spill] sm:$0xff] }
 0x4a0   :  { %v1036_v0 = vpop.f32.mrf.mxu0  ;;  %v1107_v63 = vpop.f32.mrf.mxu1 }
 0x4a1   :  { %1698 = vtanh.f32 %v1110_v53  ;;  %v1111_v4 = vadd.f32 %v1036_v0, %v189_v28  ;;  %v1113_v6 = vadd.f32 %v1107_v63, %v191_v47 }
 0x4a3   :  { %1700 = vtanh.f32 %v1111_v4  ;;  %v3110_v4 = vld [vmem:[#allocation14_spill] sm:$0xff] }
 0x4a4   :  { %1702 = vtanh.f32 %v1113_v6  ;;  %v3111_v6 = vld [vmem:[#allocation15_spill] sm:$0xff] }
 0x4a5   :  { %1704 = vtanh.f32 %v1112_v37  ;;  %v3104_v37 = vld [vmem:[#allocation33_spill] sm:$0xff] }
 0x4ae   :  { %v1699_v39 = vpop.eup %1698 }
 0x4af   :  { %v1118_v35 = vmul.f32 0.5, %v1699_v39  ;;  %v3105_v39 = vld [vmem:[#allocation9_spill] sm:$0xff] }
 0x4b0   :  { %v1701_v7 = vpop.eup %1700 }
 0x4b1   :  { %v1121_v41 = vadd.f32 0.5, %v1118_v35  ;;  %v1119_v25 = vmul.f32 0.5, %v1701_v7  ;;  %v1703_v27 = vpop.eup %1702  ;;  %v3103_v35 = vld [vmem:[#allocation8_spill] sm:$0xff]  ;;  %v3113_v7 = vld [vmem:[#allocation18_spill] sm:$0xff] }
 0x4b2   :  { %v1705_v63 = vpop.eup %1704 }
 0x4b3   :  { %v1122_v29 = vadd.f32 0.5, %v1119_v25  ;;  %v1125_v53 = vmul.f32 %v1703_v27, %v1121_v41  ;;  %v1120_v0 = vmul.f32 0.5, %v1705_v63  ;;  %v3106_v41 = vld [vmem:[#allocation10_spill] sm:$0xff]  ;;  %v3114_v25 = vld [vmem:[#allocation19_spill] sm:$0xff]  ;;  %v3116_v27 = vld [vmem:[#allocation21_spill] sm:$0xff] }
 0x4b4   :  { %v3118_v63 = vld [vmem:[#allocation23_spill] sm:$0xff] }
 0x4b5   :  { %v1124_v49 = vmul.f32 %v1122_v29, %v2434_v62  ;;  %v1123_v47 = vadd.f32 0.5, %v1120_v0  ;;  %v3108_v62 = vld [vmem:[#allocation12_spill] sm:$0xff] }
 0x4b6   :  { %v3115_v29 = vld [vmem:[#allocation20_spill] sm:$0xff] }
 0x4b7   :  { %v2643_v28 = vadd.f32 %v1125_v53, %v1124_v49  ;;  %v3107_v49 = vld [vmem:[#allocation11_spill] sm:$0xff]  ;;  %v3117_v53 = vld [vmem:[#allocation22_spill] sm:$0xff]  ;;  %v3119_v0 = vld [vmem:[#allocation24_spill] sm:$0xff] }
 0x4b9   :  { %1706 = vtanh.f32 %v2643_v28 }
 0x4c6   :  { %v1707_v33 = vpop.eup %1706 }
 0x4c7   :  { %v1128_v56 = vmul.f32 %v1707_v33, %v1123_v47  ;;  %v3120_v47 = vld [vmem:[#allocation25_spill] sm:$0xff]  ;;  %v3121_v33 = vld [vmem:[#allocation26_spill] sm:$0xff] }
 0x4c9   :  { %1199 = vmatmul.mubr.f32.vlgmr.msra.gmra.mxu0 %v1128_v56  ;;  %1270 = vmatmul.mubr.f32.vlgmr.msra.gmra.mxu1 %v1128_v56  ;;  %v3122_v56 = vld [vmem:[#allocation27_spill] sm:$0xff] }
 0x4ca   :  { %1301 = vmatpush1.msra.mxu0 %v2437_v9  ;;  %1372 = vmatpush1.msra.mxu1 %v2440_v10 }
 0x4cb   :  { %1302 = vmatprep.subr.mxu0 %v2443_v50  ;;  %1373 = vmatprep.subr.mxu1 %v2446_v11 }
 0x4cc   :  { %1303 = vmatpush1.msra.mxu0 %v2449_v12  ;;  %1374 = vmatpush1.msra.mxu1 %v2452_v13 }
 0x4cd   :  { %1304 = vmatprep.subr.mxu0 %v2455_v14  ;;  %1375 = vmatprep.subr.mxu1 %v2458_v15 }
 0x4ce   :  { %1305 = vmatpush1.msra.mxu0 %v2461_v16  ;;  %1376 = vmatpush1.msra.mxu1 %v2464_v17 }
 0x4cf   :  { %1306 = vmatprep.subr.mxu0 %v2467_v18  ;;  %1377 = vmatprep.subr.mxu1 %v2470_v19 }
 0x4d0   :  { %1307 = vmatpush1.msra.mxu0 %v2473_v20  ;;  %1378 = vmatpush1.msra.mxu1 %v2476_v21 }
 0x4d1   :  { %1308 = vmatprep.subr.mxu0 %v2479_v22  ;;  %1379 = vmatprep.subr.mxu1 %v2482_v23 }
 0x4d2   :  { %1309 = vmatpush1.msra.mxu0 %v2485_v24  ;;  %1380 = vmatpush1.msra.mxu1 %v2488_v26 }
 0x4d3   :  { %1310 = vmatprep.subr.mxu0 %v2491_v30  ;;  %1381 = vmatprep.subr.mxu1 %v2494_v31 }
 0x4d4   :  { %1311 = vmatpush1.msra.mxu0 %v2497_v32  ;;  %1382 = vmatpush1.msra.mxu1 %v2500_v34 }
 0x4d5   :  { %1312 = vmatprep.subr.mxu0 %v2503_v36  ;;  %1383 = vmatprep.subr.mxu1 %v2506_v38 }
 0x4d6   :  { %1313 = vmatpush1.msra.mxu0 %v2509_v40  ;;  %1384 = vmatpush1.msra.mxu1 %v2512_v42 }
 0x4d7   :  { %1314 = vmatprep.subr.mxu0 %v2515_v43  ;;  %1385 = vmatprep.subr.mxu1 %v2518_v52 }
 0x4d8   :  { %1315 = vmatpush1.msra.mxu0 %v2521_v1  ;;  %1386 = vmatpush1.msra.mxu1 %v2524_v51 }
 0x4d9   :  { %1316 = vmatprep.subr.mxu0 %v2527_v59  ;;  %1387 = vmatprep.subr.mxu1 %v2530_v48 }
 0x4da   :  { %1317 = vmatpush1.msra.mxu0 %v2533_v3  ;;  %1388 = vmatpush1.msra.mxu1 %v2536_v54 }
 0x4db   :  { %1318 = vmatprep.subr.mxu0 %v2539_v46  ;;  %1389 = vmatprep.subr.mxu1 %v2542_v60 }
 0x4dc   :  { %1319 = vmatpush1.msra.mxu0 %v2545_v58  ;;  %1390 = vmatpush1.msra.mxu1 %v2548_v2 }
 0x4dd   :  { %1320 = vmatprep.subr.mxu0 %v2551_v55  ;;  %1391 = vmatprep.subr.mxu1 %v2554_v45 }
 0x4de   :  { %1321 = vmatpush1.msra.mxu0 %v3103_v35  ;;  %1392 = vmatpush1.msra.mxu1 %v3104_v37 }
 0x4df   :  { %1322 = vmatprep.subr.mxu0 %v3105_v39  ;;  %1393 = vmatprep.subr.mxu1 %v3106_v41 }
 0x4e0   :  { %1323 = vmatpush1.msra.mxu0 %v3107_v49  ;;  %1394 = vmatpush1.msra.mxu1 %v3108_v62  ;;  %v3132_v62 = vld [vmem:[#allocation36_spill] sm:$0xff]  ;;  %v3133_v49 = vld [vmem:[#allocation38_spill] sm:$0xff] }
 0x4e1   :  { %1324 = vmatprep.subr.mxu0 %v3109_v57  ;;  %1395 = vmatprep.subr.mxu1 %v3110_v4  ;;  %v3131_v4 = vld [vmem:[#allocation37_spill] sm:$0xff] }
 0x4e2   :  { %1325 = vmatpush1.msra.mxu0 %v3111_v6  ;;  %1396 = vmatpush1.msra.mxu1 %v3112_v8  ;;  %v3123_v8 = vld [vmem:[#allocation29_spill] sm:$0xff]  ;;  %v3130_v6 = vld [vmem:[#allocation35_spill] sm:$0xff] }
 0x4e3   :  { %1326 = vmatprep.subr.mxu0 %v3113_v7  ;;  %1397 = vmatprep.subr.mxu1 %v3114_v25  ;;  %v3124_v7 = vmov 0.0   ;;  %v3125_v25 = vld [vmem:[#allocation30_spill] sm:$0xff] }
 0x4e4   :  { %1327 = vmatpush1.msra.mxu0 %v3115_v29  ;;  %1398 = vmatpush1.msra.mxu1 %v3116_v27  ;;  %v3126_v27 = vld [vmem:[#allocation28_spill] sm:$0xff]  ;;  %v3129_v29 = vld [vmem:[#allocation34_spill] sm:$0xff] }
 0x4e5   :  { %1328 = vmatprep.subr.mxu0 %v3117_v53  ;;  %1399 = vmatprep.subr.mxu1 %v3118_v63  ;;  %v3127_v53 = vld [vmem:[#allocation7_spill] sm:$0xff]  ;;  %v3128_v63 = vld [vmem:[#allocation17_spill] sm:$0xff] }
 0x4e6   :  { %1329 = vmatpush1.msra.mxu0 %v3119_v0  ;;  %1400 = vmatpush1.msra.mxu1 %v3120_v47  ;;  %v84_v0 = vsub.s32 6, %v3128_v63 }
 0x4e7   :  { %1330 = vmatprep.subr.mxu0 %v3121_v33  ;;  %1401 = vmatprep.subr.mxu1 %v3122_v56  ;;  %v81_v33 = vpop.permute.xlu1 %80 }
 0x4e8   :  { %1331 = vmatpush1.msra.mxu0 %v3123_v8  ;;  %1364 = vmatprep.mubr.f32.mxu0 %v3124_v7  ;;  %v85_v47 = vrot.slane %v2631_v5, %v84_v0  ;;  %v138_v56 = vmul.f32 %v3129_v29, %v81_v33  ;;  %v139_v8 = vmul.f32 %v3130_v6, %v81_v33 }
 0x4e9   :  { %1402 = vmatpush1.msra.mxu1 %v3125_v25  ;;  %1435 = vmatprep.mubr.f32.mxu1 %v3124_v7  ;;  %v141_v25 = vmul.f32 %v3132_v62, %v81_v33  ;;  %v140_v29 = vmul.f32 %v2183_v61, %v81_v33 }
 0x4ea   :  { %1466 = vmatprep.subr.mxu0 %v3126_v27  ;;  %1537 = vmatprep.subr.mxu1 %v3127_v53  ;;  %v192_v57 = vadd.f32 %v3131_v4, %v138_v56  ;;  %v193_v7 = vadd.f32 %v3133_v49, %v139_v8  ;;  %v3134_v53 = vld [vmem:[#allocation39_spill] sm:$0xff] }
 0x4eb   :  { %87 = vbcast.lane.b32.xlu0 %v85_v47, 256  ;;  %v195_v37 = vadd.f32 %v3134_v53, %v141_v25  ;;  %v194_v56 = vadd.f32 %v2186_v44, %v140_v29 }
 0x589   :  { %v1200_v41 = vpop.f32.mrf.mxu0  ;;  %v1271_v27 = vpop.f32.mrf.mxu1 }
 0x58a   :  { %v1276_v39 = vadd.f32 %v1200_v41, %v192_v57  ;;  %v1278_v4 = vadd.f32 %v1271_v27, %v194_v56 }
 0x58b   :  { %v1202_v63 = vpop.f32.mrf.mxu0  ;;  %v1273_v35 = vpop.f32.mrf.mxu1 }
 0x58c   :  { %1708 = vtanh.f32 %v1276_v39  ;;  %v1277_v0 = vadd.f32 %v1202_v63, %v193_v7  ;;  %v1279_v47 = vadd.f32 %v1273_v35, %v195_v37 }
 0x58e   :  { %1710 = vtanh.f32 %v1277_v0 }
 0x58f   :  { %1712 = vtanh.f32 %v1279_v47 }
 0x590   :  { %1714 = vtanh.f32 %v1278_v4 }
 0x599   :  { %v1709_v62 = vpop.eup %1708 }
 0x59a   :  { %v1284_v6 = vmul.f32 0.5, %v1709_v62 }
 0x59b   :  { %v1711_v8 = vpop.eup %1710 }
 0x59c   :  { %v1287_v49 = vadd.f32 0.5, %v1284_v6  ;;  %v1285_v41 = vmul.f32 0.5, %v1711_v8  ;;  %v1713_v25 = vpop.eup %1712 }
 0x59d   :  { %v1715_v35 = vpop.eup %1714 }
 0x59e   :  { %v1288_v57 = vadd.f32 0.5, %v1285_v41  ;;  %v1291_v39 = vmul.f32 %v1713_v25, %v1287_v49  ;;  %v1286_v37 = vmul.f32 0.5, %v1715_v35 }
 0x5a0   :  { %v1290_v53 = vmul.f32 %v1288_v57, %v2643_v28  ;;  %v1289_v63 = vadd.f32 0.5, %v1286_v37  ;;  %v3164_v28 = vld [vmem:[#allocation39_spill] sm:$0xff] }
 0x5a2   :  { %v2723_v7 = vadd.f32 %v1291_v39, %v1290_v53 }
 0x5a4   :  { %1716 = vtanh.f32 %v2723_v7 }
 0x5b1   :  { %v1717_v29 = vpop.eup %1716 }
 0x5b2   :  { %v1294_v33 = vmul.f32 %v1717_v29, %v1289_v63 }
 0x5b4   :  { %1365 = vmatmul.mubr.f32.vlgmr.msra.gmra.mxu0 %v1294_v33  ;;  %1436 = vmatmul.mubr.f32.vlgmr.msra.gmra.mxu1 %v1294_v33 }
 0x5b5   :  { %1467 = vmatpush1.msra.mxu0 %v2437_v9  ;;  %1538 = vmatpush1.msra.mxu1 %v2440_v10  ;;  %v3135_v9 = vld [vmem:[#allocation8_spill] sm:$0xff]  ;;  %v3136_v10 = vld [vmem:[#allocation33_spill] sm:$0xff] }
 0x5b6   :  { %1468 = vmatprep.subr.mxu0 %v2443_v50  ;;  %1539 = vmatprep.subr.mxu1 %v2446_v11  ;;  %v3137_v50 = vld [vmem:[#allocation9_spill] sm:$0xff]  ;;  %v3138_v11 = vld [vmem:[#allocation10_spill] sm:$0xff] }
 0x5b7   :  { %1469 = vmatpush1.msra.mxu0 %v2449_v12  ;;  %1540 = vmatpush1.msra.mxu1 %v2452_v13  ;;  %v3139_v12 = vld [vmem:[#allocation11_spill] sm:$0xff]  ;;  %v3140_v13 = vld [vmem:[#allocation12_spill] sm:$0xff] }
 0x5b8   :  { %1470 = vmatprep.subr.mxu0 %v2455_v14  ;;  %1541 = vmatprep.subr.mxu1 %v2458_v15  ;;  %v3141_v14 = vld [vmem:[#allocation13_spill] sm:$0xff]  ;;  %v3142_v15 = vld [vmem:[#allocation14_spill] sm:$0xff] }
 0x5b9   :  { %1471 = vmatpush1.msra.mxu0 %v2461_v16  ;;  %1542 = vmatpush1.msra.mxu1 %v2464_v17  ;;  %v3143_v16 = vld [vmem:[#allocation15_spill] sm:$0xff]  ;;  %v3144_v17 = vld [vmem:[#allocation16_spill] sm:$0xff] }
 0x5ba   :  { %1472 = vmatprep.subr.mxu0 %v2467_v18  ;;  %1543 = vmatprep.subr.mxu1 %v2470_v19  ;;  %v3145_v18 = vld [vmem:[#allocation18_spill] sm:$0xff]  ;;  %v3146_v19 = vld [vmem:[#allocation19_spill] sm:$0xff] }
 0x5bb   :  { %1473 = vmatpush1.msra.mxu0 %v2473_v20  ;;  %1544 = vmatpush1.msra.mxu1 %v2476_v21  ;;  %v3147_v20 = vld [vmem:[#allocation20_spill] sm:$0xff]  ;;  %v3148_v21 = vld [vmem:[#allocation21_spill] sm:$0xff] }
 0x5bc   :  { %1474 = vmatprep.subr.mxu0 %v2479_v22  ;;  %1545 = vmatprep.subr.mxu1 %v2482_v23  ;;  %v3149_v22 = vld [vmem:[#allocation22_spill] sm:$0xff]  ;;  %v3150_v23 = vld [vmem:[#allocation23_spill] sm:$0xff] }
 0x5bd   :  { %1475 = vmatpush1.msra.mxu0 %v2485_v24  ;;  %1546 = vmatpush1.msra.mxu1 %v2488_v26  ;;  %v3151_v24 = vld [vmem:[#allocation24_spill] sm:$0xff]  ;;  %v3152_v26 = vld [vmem:[#allocation25_spill] sm:$0xff] }
 0x5be   :  { %1476 = vmatprep.subr.mxu0 %v2491_v30  ;;  %1547 = vmatprep.subr.mxu1 %v2494_v31  ;;  %v3153_v30 = vld [vmem:[#allocation26_spill] sm:$0xff]  ;;  %v3154_v31 = vld [vmem:[#allocation27_spill] sm:$0xff] }
 0x5bf   :  { %1477 = vmatpush1.msra.mxu0 %v2497_v32  ;;  %1548 = vmatpush1.msra.mxu1 %v2500_v34  ;;  %v3155_v32 = vld [vmem:[#allocation29_spill] sm:$0xff]  ;;  %v3156_v34 = vmov 0.0  }
 0x5c0   :  { %1478 = vmatprep.subr.mxu0 %v2503_v36  ;;  %1549 = vmatprep.subr.mxu1 %v2506_v38  ;;  %v3157_v36 = vld [vmem:[#allocation30_spill] sm:$0xff]  ;;  %v3158_v38 = vld [vmem:[#allocation17_spill] sm:$0xff] }
 0x5c1   :  { %1479 = vmatpush1.msra.mxu0 %v2509_v40  ;;  %1550 = vmatpush1.msra.mxu1 %v2512_v42  ;;  %v91_v40 = vsub.s32 7, %v3158_v38 }
 0x5c2   :  { %1480 = vmatprep.subr.mxu0 %v2515_v43  ;;  %1551 = vmatprep.subr.mxu1 %v2518_v52  ;;  %v88_v43 = vpop.permute.xlu0 %87  ;;  %v3159_v52 = vld [vmem:[#allocation34_spill] sm:$0xff] }
 0x5c3   :  { %1481 = vmatpush1.msra.mxu0 %v2521_v1  ;;  %1552 = vmatpush1.msra.mxu1 %v2524_v51  ;;  %v92_v42 = vrot.slane %v2631_v5, %v91_v40  ;;  %v142_v1 = vmul.f32 %v3159_v52, %v88_v43  ;;  %v3160_v51 = vld [vmem:[#allocation35_spill] sm:$0xff]  ;;  %v144_v27 = vmul.f32 %v2183_v61, %v88_v43 }
 0x5c4   :  { %1482 = vmatprep.subr.mxu0 %v2527_v59  ;;  %1553 = vmatprep.subr.mxu1 %v2530_v48  ;;  %v143_v59 = vmul.f32 %v3160_v51, %v88_v43  ;;  %v3161_v48 = vld [vmem:[#allocation37_spill] sm:$0xff] }
 0x5c5   :  { %1483 = vmatpush1.msra.mxu0 %v2533_v3  ;;  %1554 = vmatpush1.msra.mxu1 %v2536_v54  ;;  %v196_v3 = vadd.f32 %v3161_v48, %v142_v1  ;;  %v3162_v54 = vld [vmem:[#allocation36_spill] sm:$0xff]  ;;  %v198_v53 = vadd.f32 %v2186_v44, %v144_v27 }
 0x5c6   :  { %1484 = vmatprep.subr.mxu0 %v2539_v46  ;;  %1555 = vmatprep.subr.mxu1 %v2542_v60  ;;  %v145_v46 = vmul.f32 %v3162_v54, %v88_v43  ;;  %v3163_v60 = vld [vmem:[#allocation38_spill] sm:$0xff] }
 0x5c7   :  { %1485 = vmatpush1.msra.mxu0 %v2545_v58  ;;  %1556 = vmatpush1.msra.mxu1 %v2548_v2  ;;  %v197_v58 = vadd.f32 %v3163_v60, %v143_v59 }
 0x5c8   :  { %1486 = vmatprep.subr.mxu0 %v2551_v55  ;;  %1557 = vmatprep.subr.mxu1 %v2554_v45  ;;  %v199_v49 = vadd.f32 %v3164_v28, %v145_v46  ;;  %v1653_v46 = vld [vmem:[#allocation3] ss:$0 sm:$0xff] }
 0x5c9   :  { %1487 = vmatpush1.msra.mxu0 %v3135_v9  ;;  %1558 = vmatpush1.msra.mxu1 %v3136_v10 }
 0x5ca   :  { %1488 = vmatprep.subr.mxu0 %v3137_v50  ;;  %1559 = vmatprep.subr.mxu1 %v3138_v11 }
 0x5cb   :  { %1489 = vmatpush1.msra.mxu0 %v3139_v12  ;;  %1560 = vmatpush1.msra.mxu1 %v3140_v13 }
 0x5cc   :  { %1490 = vmatprep.subr.mxu0 %v3141_v14  ;;  %1561 = vmatprep.subr.mxu1 %v3142_v15 }
 0x5cd   :  { %1491 = vmatpush1.msra.mxu0 %v3143_v16  ;;  %1562 = vmatpush1.msra.mxu1 %v3144_v17 }
 0x5ce   :  { %1492 = vmatprep.subr.mxu0 %v3145_v18  ;;  %1563 = vmatprep.subr.mxu1 %v3146_v19 }
 0x5cf   :  { %1493 = vmatpush1.msra.mxu0 %v3147_v20  ;;  %1564 = vmatpush1.msra.mxu1 %v3148_v21 }
 0x5d0   :  { %1494 = vmatprep.subr.mxu0 %v3149_v22  ;;  %1565 = vmatprep.subr.mxu1 %v3150_v23 }
 0x5d1   :  { %1495 = vmatpush1.msra.mxu0 %v3151_v24  ;;  %1566 = vmatpush1.msra.mxu1 %v3152_v26 }
 0x5d2   :  { %1496 = vmatprep.subr.mxu0 %v3153_v30  ;;  %1567 = vmatprep.subr.mxu1 %v3154_v31 }
 0x5d3   :  { %1497 = vmatpush1.msra.mxu0 %v3155_v32  ;;  %1530 = vmatprep.mubr.f32.mxu0 %v3156_v34 }
 0x5d4   :  { %1568 = vmatpush1.msra.mxu1 %v3157_v36  ;;  %1601 = vmatprep.mubr.f32.mxu1 %v3156_v34 }
 0x5d5   :  { %94 = vbcast.lane.b32.xlu1 %v92_v42, 256 }
 0x647   :  { %v95_v11 = vpop.permute.xlu1 %94 }
 0x648   :  { %v146_v12 = vmul.f32 %v3159_v52, %v95_v11  ;;  %v147_v13 = vmul.f32 %v3160_v51, %v95_v11  ;;  %v149_v14 = vmul.f32 %v3162_v54, %v95_v11  ;;  %v148_v24 = vmul.f32 %v2183_v61, %v95_v11 }
 0x64a   :  { %v200_v15 = vadd.f32 %v3161_v48, %v146_v12  ;;  %v203_v19 = vadd.f32 %v3164_v28, %v149_v14  ;;  %v202_v26 = vadd.f32 %v2186_v44, %v148_v24  ;;  %v1652_v44 = vld [vmem:[%s2819_s4] ss:$0 sm:$0xff] }
 0x674   :  { %v1366_v2 = vpop.f32.mrf.mxu0  ;;  %v1437_v55 = vpop.f32.mrf.mxu1 }
 0x675   :  { %v1442_v45 = vadd.f32 %v1366_v2, %v196_v3  ;;  %v1444_v0 = vadd.f32 %v1437_v55, %v198_v53 }
 0x676   :  { %v1368_v62 = vpop.f32.mrf.mxu0  ;;  %v1439_v4 = vpop.f32.mrf.mxu1 }
 0x677   :  { %1718 = vtanh.f32 %v1442_v45  ;;  %v1443_v5 = vadd.f32 %v1368_v62, %v197_v58  ;;  %v1445_v6 = vadd.f32 %v1439_v4, %v199_v49 }
 0x679   :  { %1720 = vtanh.f32 %v1443_v5 }
 0x67a   :  { %1722 = vtanh.f32 %v1445_v6 }
 0x67b   :  { %1724 = vtanh.f32 %v1444_v0 }
 0x684   :  { %v1719_v47 = vpop.eup %1718 }
 0x685   :  { %v1450_v56 = vmul.f32 0.5, %v1719_v47 }
 0x686   :  { %v1721_v8 = vpop.eup %1720 }
 0x687   :  { %v1453_v41 = vadd.f32 0.5, %v1450_v56  ;;  %v1451_v57 = vmul.f32 0.5, %v1721_v8  ;;  %v1723_v39 = vpop.eup %1722 }
 0x688   :  { %v1725_v29 = vpop.eup %1724 }
 0x689   :  { %v1454_v25 = vadd.f32 0.5, %v1451_v57  ;;  %v1457_v37 = vmul.f32 %v1723_v39, %v1453_v41  ;;  %v1452_v33 = vmul.f32 0.5, %v1725_v29 }
 0x68b   :  { %v1456_v35 = vmul.f32 %v1454_v25, %v2723_v7  ;;  %v1455_v9 = vadd.f32 0.5, %v1452_v33  ;;  %v201_v7 = vadd.f32 %v3163_v60, %v147_v13 }
 0x68d   :  { %v1458_v63 = vadd.f32 %v1457_v37, %v1456_v35 }
 0x68f   :  { %1726 = vtanh.f32 %v1458_v63 }
 0x69c   :  { %v1727_v10 = vpop.eup %1726 }
 0x69d   :  { %v1460_v50 = vmul.f32 %v1727_v10, %v1455_v9 }
 0x69f   :  { %1531 = vmatmul.mubr.f32.vlgmr.msra.gmra.mxu0 %v1460_v50  ;;  %1602 = vmatmul.mubr.f32.vlgmr.msra.gmra.mxu1 %v1460_v50 }
 0x75f   :  { %v1532_v16 = vpop.f32.mrf.mxu0  ;;  %v1603_v17 = vpop.f32.mrf.mxu1 }
 0x760   :  { %v1608_v18 = vadd.f32 %v1532_v16, %v200_v15  ;;  %v1610_v30 = vadd.f32 %v1603_v17, %v202_v26 }
 0x761   :  { %v1534_v20 = vpop.f32.mrf.mxu0  ;;  %v1605_v21 = vpop.f32.mrf.mxu1 }
 0x762   :  { %1728 = vtanh.f32 %v1608_v18  ;;  %v1609_v22 = vadd.f32 %v1534_v20, %v201_v7  ;;  %v1611_v23 = vadd.f32 %v1605_v21, %v203_v19 }
 0x764   :  { %1730 = vtanh.f32 %v1609_v22 }
 0x765   :  { %1732 = vtanh.f32 %v1611_v23 }
 0x766   :  { %1734 = vtanh.f32 %v1610_v30 }
 0x76f   :  { %v1729_v31 = vpop.eup %1728 }
 0x770   :  { %v1616_v32 = vmul.f32 0.5, %v1729_v31 }
 0x771   :  { %v1731_v34 = vpop.eup %1730 }
 0x772   :  { %v1619_v36 = vadd.f32 0.5, %v1616_v32  ;;  %v1617_v38 = vmul.f32 0.5, %v1731_v34  ;;  %v1733_v42 = vpop.eup %1732 }
 0x773   :  { %v1735_v51 = vpop.eup %1734 }
 0x774   :  { %v1620_v40 = vadd.f32 0.5, %v1617_v38  ;;  %v1623_v52 = vmul.f32 %v1733_v42, %v1619_v36  ;;  %v1618_v59 = vmul.f32 0.5, %v1735_v51 }
 0x776   :  { %v1622_v43 = vmul.f32 %v1620_v40, %v1458_v63  ;;  %v1621_v48 = vadd.f32 0.5, %v1618_v59 }
 0x778   :  { %v1624_v1 = vadd.f32 %v1623_v52, %v1622_v43 }
 0x77a   :  { %1736 = vtanh.f32 %v1624_v1 }
 0x787   :  { %v1737_v61 = vpop.eup %1736 }
 0x788   :  { %v1626_v3 = vmul.f32 %v1737_v61, %v1621_v48 }
 0x78a   :  { %v1634_v54 = vmul.f32 %v1652_v44, %v1626_v3 }
 0x78c   :  { %1635 = vadd.xlane.f32.xlu0 %v1634_v54 }
 0x815   :  { %v1636_v60 = vpop.xlane.xlu0 %1635 }
 0x816   :  { %v1644_v58 = vadd.f32 %v1653_v46, %v1636_v60 }
 0x818   :  { %1646 = vst.msk [vmem:[%s2821_s6] sm:$0xff] %vm1645_vm0, %v1644_v58 }
 0x819   :  { %1651 = vsyncpa [#allocation5], 1 }

</bundles_post_ra>
